<compile_context>
chip_gen: v7x
topology: tpu7x:2x2x1
jax: 0.10.0
libtpu: 0.0.40
codegen_flags: <defaults>
</compile_context>

<pallas_src>
import functools

import jax
import jax.numpy as jnp
from jax.experimental import pallas as pl
from jax.experimental.pallas import tpu as pltpu


def _round_up(x, m):
    return (x + m - 1) // m * m


# ---------------------------------------------------------------------------
# Fused CLLA attention kernel (one row tile of TM pixels).
#   x2   : (TM, Cp)    f32   query source + residual
#   loc  : (R, TM, Cp) bf16  stride-2 gathered x1 neighbours
#   wq   : (Cp, Cp)    bf16  (already scaled by 1/range)
#   wkv  : (Cp, 2Cp)   bf16  [wk | wv]
#   bq   : (1, Cp)     f32   (already scaled by 1/range)
#   bkv  : (1, 2Cp)    f32   [bk | bv]
#   out  : (TM, Cp)    f32   = (sum_r softmax_r(2*mean - dots)_r * v_r + x2)/2
# ---------------------------------------------------------------------------
def _clla_kernel(x2_ref, loc_ref, wq_ref, wkv_ref, bq_ref, bkv_ref, o_ref, *, R):
    tm, cp = x2_ref.shape
    x2 = x2_ref[...]                                                # (TM, Cp) f32

    # q projection (1/range already folded into wq / bq by the wrapper).
    q = jnp.dot(x2.astype(jnp.bfloat16), wq_ref[...],
                preferred_element_type=jnp.float32) + bq_ref[...]   # (TM, Cp)

    # All R k/v projections as ONE wide MXU matmul.
    loc2d = loc_ref[...].reshape(R * tm, cp)                        # bf16
    kv = jnp.dot(loc2d, wkv_ref[...],
                 preferred_element_type=jnp.float32) + bkv_ref[...]  # (R*TM, 2Cp)

    # dots_r = sum_c q_c * k_rc  (q already carries the 1/range factor)
    dots = []
    for r in range(R):                                              # R static, unrolled
        k_r = kv[r * tm:(r + 1) * tm, :cp]
        dots.append(jnp.sum(q * k_r, axis=-1, keepdims=True))       # (TM, 1)

    mean = sum(dots) * (1.0 / R)
    irr = [2.0 * mean - d for d in dots]
    m = irr[0]
    for t in irr[1:]:
        m = jnp.maximum(m, t)
    es = [jnp.exp(t - m) for t in irr]
    inv_denom = pl.reciprocal(sum(es), approx=True)                 # EUP slot, ~free

    acc = (es[0] * inv_denom) * kv[0:tm, cp:]
    for r in range(1, R):
        acc = acc + (es[r] * inv_denom) * kv[r * tm:(r + 1) * tm, cp:]

    o_ref[...] = ((acc + x2) * 0.5).astype(o_ref.dtype)


def clla_attention(x2f, loc, wq, wkv, bq, bkv, *, tm):
    R, Np, Cp = loc.shape
    kernel = functools.partial(_clla_kernel, R=R)
    return pl.pallas_call(
        kernel,
        out_shape=jax.ShapeDtypeStruct((Np, Cp), jnp.float32),
        grid=(Np // tm,),
        in_specs=[
            pl.BlockSpec((tm, Cp), lambda i: (i, 0)),
            pl.BlockSpec((R, tm, Cp), lambda i: (0, i, 0)),
            pl.BlockSpec((Cp, Cp), lambda i: (0, 0)),
            pl.BlockSpec((Cp, 2 * Cp), lambda i: (0, 0)),
            pl.BlockSpec((1, Cp), lambda i: (0, 0)),
            pl.BlockSpec((1, 2 * Cp), lambda i: (0, 0)),
        ],
        out_specs=pl.BlockSpec((tm, Cp), lambda i: (i, 0)),
        compiler_params=pltpu.CompilerParams(
            dimension_semantics=("parallel",),
            vmem_limit_bytes=64 * 1024 * 1024,
        ),
    )(x2f, loc, wq, wkv, bq, bkv)


# ---------------------------------------------------------------------------
# Parameters: weights stored as (in, out) so kernels compute x @ W + b.
# ---------------------------------------------------------------------------
def init_params(key, c, scale=0.1):
    ks = jax.random.split(key, 3)

    def lin(k):
        kw, kb = jax.random.split(k)
        w = jax.random.normal(kw, (c, c), jnp.float32) * scale
        b = jax.random.normal(kb, (c,), jnp.float32) * scale
        return w, b

    return {"q": lin(ks[0]), "k": lin(ks[1]), "v": lin(ks[2])}


# ---------------------------------------------------------------------------
# Forward pass (matches CLLA.forward semantics). x1, x2 are NCHW, same C.
# ---------------------------------------------------------------------------
def clla_forward(params, x1_nchw, x2_nchw, *, rng=2, tm=256):
    wq, bq = params["q"]
    wk, bk = params["k"]
    wv, bv = params["v"]
    C = wq.shape[0]
    B, C1, W1, H1 = x1_nchw.shape
    _, C2, W2, H2 = x2_nchw.shape
    assert C1 == C2 == C

    # NCHW -> NHWC; x1 goes to bf16 right away (only feeds the k/v matmuls).
    x1 = jnp.transpose(x1_nchw, (0, 2, 3, 1)).astype(jnp.bfloat16)   # (B, W1, H1, C)
    x2 = jnp.transpose(x2_nchw, (0, 2, 3, 1))                        # (B, W2, H2, C)

    # stride-2 local neighbourhood gather (layout glue only).
    # TODO(synk): replace the materialized loc stack with an in-kernel strided
    # DMA gather from x1 (memory_space=pl.ANY) to avoid the extra HBM copy.
    R = int(rng) * int(rng)
    pad = int(rng / 2 - 1)
    x1p = jnp.pad(x1, ((0, 0), (pad, pad), (pad, pad), (0, 0)))
    locs = []
    for i in range(int(rng)):
        for j in range(int(rng)):
            locs.append(x1p[:, i::2, j::2, :][:, :W2, :H2, :])       # (B, W2, H2, C)
    loc = jnp.stack(locs, axis=0).reshape(R, B * W2 * H2, C)         # bf16

    # row / channel padding for lane-dense, (8,128)-aligned tiles.
    N = B * W2 * H2
    Cp = _round_up(C, 128)
    tm = max(16, min(tm, _round_up(N, 16)))
    Np = _round_up(N, tm)

    x2f = jnp.pad(x2.reshape(N, C), ((0, Np - N), (0, Cp - C)))      # f32
    loc = jnp.pad(loc, ((0, 0), (0, Np - N), (0, Cp - C)))           # bf16

    # fold the 1/range scale into the q projection; concat [wk | wv].
    inv_range = 1.0 / float(rng)
    wq_p = jnp.pad(wq * inv_range, ((0, Cp - C), (0, Cp - C))).astype(jnp.bfloat16)
    bq_p = jnp.pad(bq * inv_range, (0, Cp - C)).reshape(1, Cp)
    wk_p = jnp.pad(wk, ((0, Cp - C), (0, Cp - C)))
    wv_p = jnp.pad(wv, ((0, Cp - C), (0, Cp - C)))
    wkv_p = jnp.concatenate([wk_p, wv_p], axis=1).astype(jnp.bfloat16)  # (Cp, 2Cp)
    bkv_p = jnp.concatenate([jnp.pad(bk, (0, Cp - C)),
                             jnp.pad(bv, (0, Cp - C))]).reshape(1, 2 * Cp)

    out = clla_attention(x2f, loc, wq_p, wkv_p, bq_p, bkv_p, tm=tm)  # (Np, Cp)
    out = out[:N, :C].reshape(B, W2, H2, C)
    return jnp.transpose(out, (0, 3, 1, 2))                          # (B, C, W2, H2)


# ---------------------------------------------------------------------------
# Pure-JAX reference (mirrors the PyTorch forward, all f32).
# ---------------------------------------------------------------------------
def clla_reference(params, x1_nchw, x2_nchw, rng=2):
    wq, bq = params["q"]
    wk, bk = params["k"]
    wv, bv = params["v"]
    B, C, W1, H1 = x1_nchw.shape
    _, _, W2, H2 = x2_nchw.shape
    x2_ = jnp.transpose(x2_nchw, (0, 2, 3, 1))[:, :, :, None, :]     # (B,W2,H2,1,C)
    pad = int(rng / 2 - 1)
    x1p = jnp.pad(x1_nchw, ((0, 0), (0, 0), (pad, pad), (pad, pad)))
    local = []
    for i in range(int(rng)):
        for j in range(int(rng)):
            local.append(x1p[:, :, i::2, j::2][:, :, :W2, :H2][:, :, None])
    local = jnp.concatenate(local, axis=2)                           # (B,C,R,W2,H2)
    x1l = jnp.transpose(local, (0, 3, 4, 2, 1))                      # (B,W2,H2,R,C)
    q = x2_ @ wq + bq
    k = x1l @ wk + bk
    v = x1l @ wv + bv
    dots = jnp.sum(q * k / rng, axis=4)                              # (B,W2,H2,R)
    irr = jnp.mean(dots, axis=3, keepdims=True) * 2 - dots
    att = jax.nn.softmax(irr, axis=-1)
    out = jnp.sum(v * att[..., None], axis=3)                        # (B,W2,H2,C)
    out = jnp.transpose(out, (0, 3, 1, 2))                           # (B,C,W2,H2)
    return (out + x2_nchw) / 2


if __name__ == "__main__":
    key = jax.random.PRNGKey(0)
    k1, k2, kp = jax.random.split(key, 3)

    # small shapes consistent with the module (x1 finer map, x2 coarser, same C)
    B, C, RANGE = 2, 32, 2
    W1 = H1 = 16
    W2 = H2 = 8

    x1 = jax.random.normal(k1, (B, C, W1, H1), jnp.float32)
    x2 = jax.random.normal(k2, (B, C, W2, H2), jnp.float32)
    params = init_params(kp, C)

    fwd = jax.jit(functools.partial(clla_forward, rng=RANGE))
    y = fwd(params, x1, x2)
    jax.block_until_ready(y)

    assert y.shape == (B, C, W2, H2), y.shape
    assert bool(jnp.all(jnp.isfinite(y)))

    y_ref = clla_reference(params, x1, x2, rng=RANGE)
    err = float(jnp.max(jnp.abs(y - y_ref)))
    assert err < 5e-2, err
    print("KERNEL_OK")
</pallas_src>

<mosaic_0001>
module attributes {stable_mosaic.version = 11 : i64} {
  func.func @_clla_kernel(%arg0: i32, %arg1: memref<128x128xf32, #tpu.memory_space<vmem>>, %arg2: memref<4x128x128xbf16, #tpu.memory_space<vmem>>, %arg3: memref<128x128xbf16, #tpu.memory_space<vmem>>, %arg4: memref<128x256xbf16, #tpu.memory_space<vmem>>, %arg5: memref<1x128xf32, #tpu.memory_space<vmem>>, %arg6: memref<1x256xf32, #tpu.memory_space<vmem>>, %arg7: memref<128x128xf32, #tpu.memory_space<vmem>>) attributes {dimension_semantics = [#tpu.dimension_semantics<parallel>], iteration_bounds = array<i64: 1>, scalar_prefetch = 0 : i64, scratch_operands = 0 : i64, tpu.core_type = #tpu.core_type<tc>, window_params = [{transform_indices = @transform_0, window_bounds = array<i64: 128, 128>}, {transform_indices = @transform_1, window_bounds = array<i64: 4, 128, 128>}, {pipeline_mode = #tpu.pipeline_mode<synchronous>, transform_indices = @transform_2, window_bounds = array<i64: 128, 128>}, {pipeline_mode = #tpu.pipeline_mode<synchronous>, transform_indices = @transform_3, window_bounds = array<i64: 128, 256>}, {pipeline_mode = #tpu.pipeline_mode<synchronous>, transform_indices = @transform_4, window_bounds = array<i64: 1, 128>}, {pipeline_mode = #tpu.pipeline_mode<synchronous>, transform_indices = @transform_5, window_bounds = array<i64: 1, 256>}, {transform_indices = @transform_6, window_bounds = array<i64: 128, 128>}]} {
    %c0 = arith.constant 0 : index
    %c0_0 = arith.constant 0 : index
    %0 = vector.load %arg1[%c0, %c0_0] : memref<128x128xf32, #tpu.memory_space<vmem>>, vector<128x128xf32>
    %1 = arith.truncf %0 : vector<128x128xf32> to vector<128x128xbf16>
    %c0_1 = arith.constant 0 : index
    %c0_2 = arith.constant 0 : index
    %2 = vector.load %arg3[%c0_1, %c0_2] : memref<128x128xbf16, #tpu.memory_space<vmem>>, vector<128x128xbf16>
    %cst = arith.constant dense<0.000000e+00> : vector<128x128xf32>
    %3 = tpu.matmul %1, %2, %cst {dimension_numbers = #tpu.dot_dimension_numbers<[1], [0], [0], [1], [0, 0, 1, 1], [], []>} : vector<128x128xbf16>, vector<128x128xbf16>, vector<128x128xf32> -> vector<128x128xf32>
    %c0_3 = arith.constant 0 : index
    %c0_4 = arith.constant 0 : index
    %4 = vector.load %arg5[%c0_3, %c0_4] : memref<1x128xf32, #tpu.memory_space<vmem>>, vector<1x128xf32>
    %5 = vector.broadcast %4 : vector<1x128xf32> to vector<128x128xf32>
    %6 = arith.addf %3, %5 : vector<128x128xf32>
    %c0_5 = arith.constant 0 : index
    %c0_6 = arith.constant 0 : index
    %c0_7 = arith.constant 0 : index
    %7 = vector.load %arg2[%c0_5, %c0_6, %c0_7] : memref<4x128x128xbf16, #tpu.memory_space<vmem>>, vector<4x128x128xbf16>
    %8 = vector.shape_cast %7 : vector<4x128x128xbf16> to vector<512x128xbf16>
    %c0_8 = arith.constant 0 : index
    %c0_9 = arith.constant 0 : index
    %9 = vector.load %arg4[%c0_8, %c0_9] : memref<128x256xbf16, #tpu.memory_space<vmem>>, vector<128x256xbf16>
    %cst_10 = arith.constant dense<0.000000e+00> : vector<512x256xf32>
    %10 = tpu.matmul %8, %9, %cst_10 {dimension_numbers = #tpu.dot_dimension_numbers<[1], [0], [0], [1], [0, 0, 1, 1], [], []>} : vector<512x128xbf16>, vector<128x256xbf16>, vector<512x256xf32> -> vector<512x256xf32>
    %c0_11 = arith.constant 0 : index
    %c0_12 = arith.constant 0 : index
    %11 = vector.load %arg6[%c0_11, %c0_12] : memref<1x256xf32, #tpu.memory_space<vmem>>, vector<1x256xf32>
    %12 = vector.broadcast %11 : vector<1x256xf32> to vector<512x256xf32>
    %13 = arith.addf %10, %12 : vector<512x256xf32>
    %14 = vector.extract_strided_slice %13 {offsets = [0, 0], sizes = [128, 128], strides = [1, 1]} : vector<512x256xf32> to vector<128x128xf32>
    %15 = arith.mulf %6, %14 : vector<128x128xf32>
    %cst_13 = arith.constant dense<0.000000e+00> : vector<128xf32>
    %16 = vector.multi_reduction <add>, %15, %cst_13 [1] : vector<128x128xf32> to vector<128xf32>
    %17 = vector.shape_cast %16 : vector<128xf32> to vector<128x1xf32>
    %18 = vector.extract_strided_slice %13 {offsets = [128, 0], sizes = [128, 128], strides = [1, 1]} : vector<512x256xf32> to vector<128x128xf32>
    %19 = arith.mulf %6, %18 : vector<128x128xf32>
    %cst_14 = arith.constant dense<0.000000e+00> : vector<128xf32>
    %20 = vector.multi_reduction <add>, %19, %cst_14 [1] : vector<128x128xf32> to vector<128xf32>
    %21 = vector.shape_cast %20 : vector<128xf32> to vector<128x1xf32>
    %22 = vector.extract_strided_slice %13 {offsets = [256, 0], sizes = [128, 128], strides = [1, 1]} : vector<512x256xf32> to vector<128x128xf32>
    %23 = arith.mulf %6, %22 : vector<128x128xf32>
    %cst_15 = arith.constant dense<0.000000e+00> : vector<128xf32>
    %24 = vector.multi_reduction <add>, %23, %cst_15 [1] : vector<128x128xf32> to vector<128xf32>
    %25 = vector.shape_cast %24 : vector<128xf32> to vector<128x1xf32>
    %26 = vector.extract_strided_slice %13 {offsets = [384, 0], sizes = [128, 128], strides = [1, 1]} : vector<512x256xf32> to vector<128x128xf32>
    %27 = arith.mulf %6, %26 : vector<128x128xf32>
    %cst_16 = arith.constant dense<0.000000e+00> : vector<128xf32>
    %28 = vector.multi_reduction <add>, %27, %cst_16 [1] : vector<128x128xf32> to vector<128xf32>
    %29 = vector.shape_cast %28 : vector<128xf32> to vector<128x1xf32>
    %cst_17 = arith.constant 0.000000e+00 : f32
    %30 = vector.broadcast %cst_17 : f32 to vector<128x1xf32>
    %31 = arith.addf %30, %17 : vector<128x1xf32>
    %32 = arith.addf %31, %21 : vector<128x1xf32>
    %33 = arith.addf %32, %25 : vector<128x1xf32>
    %34 = arith.addf %33, %29 : vector<128x1xf32>
    %cst_18 = arith.constant 2.500000e-01 : f32
    %35 = vector.broadcast %cst_18 : f32 to vector<128x1xf32>
    %36 = arith.mulf %34, %35 : vector<128x1xf32>
    %cst_19 = arith.constant 2.000000e+00 : f32
    %37 = vector.broadcast %cst_19 : f32 to vector<128x1xf32>
    %38 = arith.mulf %37, %36 : vector<128x1xf32>
    %39 = arith.subf %38, %17 : vector<128x1xf32>
    %cst_20 = arith.constant 2.000000e+00 : f32
    %40 = vector.broadcast %cst_20 : f32 to vector<128x1xf32>
    %41 = arith.mulf %40, %36 : vector<128x1xf32>
    %42 = arith.subf %41, %21 : vector<128x1xf32>
    %cst_21 = arith.constant 2.000000e+00 : f32
    %43 = vector.broadcast %cst_21 : f32 to vector<128x1xf32>
    %44 = arith.mulf %43, %36 : vector<128x1xf32>
    %45 = arith.subf %44, %25 : vector<128x1xf32>
    %cst_22 = arith.constant 2.000000e+00 : f32
    %46 = vector.broadcast %cst_22 : f32 to vector<128x1xf32>
    %47 = arith.mulf %46, %36 : vector<128x1xf32>
    %48 = arith.subf %47, %29 : vector<128x1xf32>
    %49 = arith.maximumf %39, %42 : vector<128x1xf32>
    %50 = arith.maximumf %49, %45 : vector<128x1xf32>
    %51 = arith.maximumf %50, %48 : vector<128x1xf32>
    %52 = arith.subf %39, %51 : vector<128x1xf32>
    %53 = math.exp %52 : vector<128x1xf32>
    %54 = arith.subf %42, %51 : vector<128x1xf32>
    %55 = math.exp %54 : vector<128x1xf32>
    %56 = arith.subf %45, %51 : vector<128x1xf32>
    %57 = math.exp %56 : vector<128x1xf32>
    %58 = arith.subf %48, %51 : vector<128x1xf32>
    %59 = math.exp %58 : vector<128x1xf32>
    %cst_23 = arith.constant 0.000000e+00 : f32
    %60 = vector.broadcast %cst_23 : f32 to vector<128x1xf32>
    %61 = arith.addf %60, %53 : vector<128x1xf32>
    %62 = arith.addf %61, %55 : vector<128x1xf32>
    %63 = arith.addf %62, %57 : vector<128x1xf32>
    %64 = arith.addf %63, %59 : vector<128x1xf32>
    %65 = tpu.reciprocal %64 {approx = true} : vector<128x1xf32> -> vector<128x1xf32>
    %66 = arith.mulf %53, %65 : vector<128x1xf32>
    %67 = vector.extract_strided_slice %13 {offsets = [0, 128], sizes = [128, 128], strides = [1, 1]} : vector<512x256xf32> to vector<128x128xf32>
    %68 = vector.broadcast %66 : vector<128x1xf32> to vector<128x128xf32>
    %69 = arith.mulf %68, %67 : vector<128x128xf32>
    %70 = arith.mulf %55, %65 : vector<128x1xf32>
    %71 = vector.extract_strided_slice %13 {offsets = [128, 128], sizes = [128, 128], strides = [1, 1]} : vector<512x256xf32> to vector<128x128xf32>
    %72 = vector.broadcast %70 : vector<128x1xf32> to vector<128x128xf32>
    %73 = arith.mulf %72, %71 : vector<128x128xf32>
    %74 = arith.addf %69, %73 : vector<128x128xf32>
    %75 = arith.mulf %57, %65 : vector<128x1xf32>
    %76 = vector.extract_strided_slice %13 {offsets = [256, 128], sizes = [128, 128], strides = [1, 1]} : vector<512x256xf32> to vector<128x128xf32>
    %77 = vector.broadcast %75 : vector<128x1xf32> to vector<128x128xf32>
    %78 = arith.mulf %77, %76 : vector<128x128xf32>
    %79 = arith.addf %74, %78 : vector<128x128xf32>
    %80 = arith.mulf %59, %65 : vector<128x1xf32>
    %81 = vector.extract_strided_slice %13 {offsets = [384, 128], sizes = [128, 128], strides = [1, 1]} : vector<512x256xf32> to vector<128x128xf32>
    %82 = vector.broadcast %80 : vector<128x1xf32> to vector<128x128xf32>
    %83 = arith.mulf %82, %81 : vector<128x128xf32>
    %84 = arith.addf %79, %83 : vector<128x128xf32>
    %85 = arith.addf %84, %0 : vector<128x128xf32>
    %cst_24 = arith.constant 5.000000e-01 : f32
    %86 = vector.broadcast %cst_24 : f32 to vector<128x128xf32>
    %87 = arith.mulf %85, %86 : vector<128x128xf32>
    %c0_25 = arith.constant 0 : index
    %c0_26 = arith.constant 0 : index
    %88 = vector.load %arg7[%c0_25, %c0_26] : memref<128x128xf32, #tpu.memory_space<vmem>>, vector<128x128xf32>
    tpu.vector_store %arg7[%c0_25, %c0_26], %87 {strides = array<i32>} : memref<128x128xf32, #tpu.memory_space<vmem>>, vector<128x128xf32>,
    return
  }
  func.func @transform_0(%arg0: i32) -> (i32, i32) {
    %c0_i32 = arith.constant 0 : i32
    %c0_i32_0 = arith.constant 0 : i32
    return %arg0, %c0_i32 : i32, i32
  }
  func.func @transform_1(%arg0: i32) -> (i32, i32, i32) {
    %c0_i32 = arith.constant 0 : i32
    %c0_i32_0 = arith.constant 0 : i32
    %c0_i32_1 = arith.constant 0 : i32
    return %c0_i32, %arg0, %c0_i32_0 : i32, i32, i32
  }
  func.func @transform_2(%arg0: i32) -> (i32, i32) {
    %c0_i32 = arith.constant 0 : i32
    %c0_i32_0 = arith.constant 0 : i32
    %c0_i32_1 = arith.constant 0 : i32
    return %c0_i32, %c0_i32_0 : i32, i32
  }
  func.func @transform_3(%arg0: i32) -> (i32, i32) {
    %c0_i32 = arith.constant 0 : i32
    %c0_i32_0 = arith.constant 0 : i32
    %c0_i32_1 = arith.constant 0 : i32
    return %c0_i32, %c0_i32_0 : i32, i32
  }
  func.func @transform_4(%arg0: i32) -> (i32, i32) {
    %c0_i32 = arith.constant 0 : i32
    %c0_i32_0 = arith.constant 0 : i32
    %c0_i32_1 = arith.constant 0 : i32
    return %c0_i32, %c0_i32_0 : i32, i32
  }
  func.func @transform_5(%arg0: i32) -> (i32, i32) {
    %c0_i32 = arith.constant 0 : i32
    %c0_i32_0 = arith.constant 0 : i32
    %c0_i32_1 = arith.constant 0 : i32
    return %c0_i32, %c0_i32_0 : i32, i32
  }
  func.func @transform_6(%arg0: i32) -> (i32, i32) {
    %c0_i32 = arith.constant 0 : i32
    %c0_i32_0 = arith.constant 0 : i32
    return %arg0, %c0_i32 : i32, i32
  }
}

</mosaic_0001>

<bundles_post_ra>
// kernel: clla_forward.1
= control target key start
LH: loop header
LB: loop body
LE: loop exit
PB: predicated region body
PF: predicated region fallthrough
CT: control target
= control target key end

     0   :  { %11 = vsyncpa [#allocation3], 0  ;;  %s3893_s0 = inlined_call_operand.hbm [shape: f32[128,128], index: 0, kind: input, shape index: {}]   ;;  %s3894_s1 = inlined_call_operand.hbm [shape: bf16[4,128,128], index: 1, kind: input, shape index: {}]   ;;  %s3895_s2 = inlined_call_operand.hbm [shape: bf16[128,128], index: 2, kind: input, shape index: {}]   ;;  %s3896_s3 = inlined_call_operand.hbm [shape: bf16[128,256], index: 3, kind: input, shape index: {}]   ;;  %s3897_s4 = inlined_call_operand.hbm [shape: f32[1,128], index: 4, kind: input, shape index: {}]   ;;  %s3898_s5 = inlined_call_operand.hbm [shape: f32[1,256], index: 5, kind: input, shape index: {}]   ;;  %s3899_s6 = inlined_call_operand.hbm [shape: f32[128,128], index: 6, kind: output, shape index: {}]  }
   0x1   :  { %12 = vsyncpa [#allocation6], 0 }
   0x2   :  { %13 = vsyncpa [#allocation9], 0 }
   0x3   :  { %14 = vsyncpa [#allocation12], 0 }
   0x4   :  { %15 = vsyncpa [#allocation4], 0  ;;  %s2465_s21 = smov [#allocation5]   ;;  %s2301_s25 = scalar_lea.hbm %s3894_s1, 4096 }
   0x5   :  { %s33_s22 = sshll.u32 %s2465_s21, 4  ;;  %p2302_p0 = scmp.ne.s32.totalorder %s3894_s1, %s2301_s25  ;;  %s34_s22 = int_to_ptr.vmem [resolvable:$true] %s33_s22 }
   0x6   :  { %p2305_p1 = scmp.lt.u32.totalorder %s2301_s25, %s3894_s1 }
   0x8   :  { %p2307_p2 = pnand %p2305_p1, %p2302_p0 }
   0xa   :  { %2310 = shalt.err (!%p2307_p2)
}
   0xb   :  { %s2311_s30 = scalar_lea.vmem %s34_s22, 4096  ;;  %p2316_p4 = scmp.lt.s32.totalorder %s34_s22, %s34_s22 }
   0xc   :  { %p2312_p3 = scmp.ne.s32.totalorder %s34_s22, %s2311_s30  ;;  %p2317_p5 = scmp.lt.s32.totalorder %s2311_s30, %s2311_s30 }
   0xe   :  { %p2318_p6 = por %p2317_p5, %p2316_p4 }
  0x10   :  { %p2319_p7 = pnand %p2318_p6, %p2312_p3 }
  0x12   :  { %2322 = shalt.err (!%p2319_p7)
}
  0x13   :  { %s2466_s7 = smov 64   ;;  %s2467_s8 = smov 4  }
  0x14   :  { %39 = dma.hbm_to_vmem [thread:$0]  %s3894_s1, 4096, %s34_s22, [#allocation6], %s2466_s7, %s2466_s7, %s2467_s8  }
  0x15   :  { %s2468_s11 = smov [#allocation8]   ;;  %s2469_s13 = smov [#allocation2]  }
  0x16   :  { %s57_s12 = sshll.u32 %s2468_s11, 4  ;;  %s21_s14 = sshll.u32 %s2469_s13, 4  ;;  %s58_s12 = int_to_ptr.vmem [resolvable:$true] %s57_s12  ;;  %s22_s14 = int_to_ptr.vmem [resolvable:$true] %s21_s14 }
  0x17   :  { %s2323_s17 = scalar_lea.hbm %s3896_s3, 2048 }
  0x18   :  { %p2324_p8 = scmp.ne.s32.totalorder %s3896_s3, %s2323_s17  ;;  %p2327_p9 = scmp.lt.u32.totalorder %s2323_s17, %s3896_s3 }
  0x1a   :  { %p2329_p10 = pnand %p2327_p9, %p2324_p8 }
  0x1c   :  { %2332 = shalt.err (!%p2329_p10)
}
  0x1d   :  { %s2333_s1 = scalar_lea.vmem %s58_s12, 2048  ;;  %p2338_p12 = scmp.lt.s32.totalorder %s58_s12, %s58_s12 }
  0x1e   :  { %p2334_p11 = scmp.ne.s32.totalorder %s58_s12, %s2333_s1  ;;  %p2339_p13 = scmp.lt.s32.totalorder %s2333_s1, %s2333_s1 }
  0x20   :  { %p2340_p0 = por %p2339_p13, %p2338_p12 }
  0x22   :  { %p2341_p1 = pnand %p2340_p0, %p2334_p11 }
  0x24   :  { %2344 = shalt.err (!%p2341_p1)
}
  0x25   :  { %s2470_s22 = smov 128   ;;  %s2471_s23 = smov 8  }
  0x26   :  { %63 = dma.hbm_to_vmem [thread:$0]  %s3896_s3, 2048, %s58_s12, [#allocation9], %s2470_s22, %s2470_s22, %s2471_s23  }
  0x27   :  { %s2345_s28 = scalar_lea.hbm %s3893_s0, 2048 }
  0x28   :  { %p2346_p2 = scmp.ne.s32.totalorder %s3893_s0, %s2345_s28  ;;  %p2349_p3 = scmp.lt.u32.totalorder %s2345_s28, %s3893_s0 }
  0x2a   :  { %p2351_p4 = pnand %p2349_p3, %p2346_p2 }
  0x2c   :  { %2354 = shalt.err (!%p2351_p4)
}
  0x2d   :  { %s2355_s11 = scalar_lea.vmem %s22_s14, 2048  ;;  %p2360_p6 = scmp.lt.s32.totalorder %s22_s14, %s22_s14 }
  0x2e   :  { %p2356_p5 = scmp.ne.s32.totalorder %s22_s14, %s2355_s11  ;;  %p2361_p7 = scmp.lt.s32.totalorder %s2355_s11, %s2355_s11 }
  0x30   :  { %p2362_p8 = por %p2361_p7, %p2360_p6 }
  0x32   :  { %p2363_p9 = pnand %p2362_p8, %p2356_p5 }
  0x34   :  { %2366 = shalt.err (!%p2363_p9)
}
  0x35   :  { %27 = dma.hbm_to_vmem [thread:$0]  %s3893_s0, 2048, %s22_s14, [#allocation3], %s2470_s22, %s2470_s22, %s2471_s23  }
  0x36   :  { %s2472_s13 = smov [#allocation7]   ;;  %s2473_s16 = smov [#allocation10]  }
  0x37   :  { %s45_s15 = sshll.u32 %s2472_s13, 4  ;;  %s70_s17 = sshll.u32 %s2473_s16, 4  ;;  %s46_s15 = int_to_ptr.vmem [resolvable:$true] %s45_s15  ;;  %s71_s17 = int_to_ptr.vmem [resolvable:$true] %s70_s17 }
  0x38   :  { %s2367_s20 = scalar_lea.hbm %s3895_s2, 1024 }
  0x39   :  { %p2368_p10 = scmp.ne.s32.totalorder %s3895_s2, %s2367_s20  ;;  %p2371_p11 = scmp.lt.u32.totalorder %s2367_s20, %s3895_s2 }
  0x3b   :  { %p2373_p12 = pnand %p2371_p11, %p2368_p10 }
  0x3d   :  { %2376 = shalt.err (!%p2373_p12)
}
  0x3e   :  { %s2377_s0 = scalar_lea.vmem %s46_s15, 1024  ;;  %p2382_p0 = scmp.lt.s32.totalorder %s46_s15, %s46_s15 }
  0x3f   :  { %p2378_p13 = scmp.ne.s32.totalorder %s46_s15, %s2377_s0  ;;  %p2383_p1 = scmp.lt.s32.totalorder %s2377_s0, %s2377_s0 }
  0x41   :  { %p2384_p2 = por %p2383_p1, %p2382_p0 }
  0x43   :  { %p2385_p3 = pnand %p2384_p2, %p2378_p13 }
  0x45   :  { %2388 = shalt.err (!%p2385_p3)
}
  0x46   :  { %51 = dma.hbm_to_vmem [thread:$0]  %s3895_s2, 1024, %s46_s15, [#allocation6], %s2466_s7, %s2466_s7, %s2467_s8  }
  0x47   :  { %s2389_s29 = scalar_lea.hbm %s3897_s4, 16 }
  0x48   :  { %p2390_p4 = scmp.ne.s32.totalorder %s3897_s4, %s2389_s29  ;;  %p2393_p5 = scmp.lt.u32.totalorder %s2389_s29, %s3897_s4 }
  0x4a   :  { %p2395_p6 = pnand %p2393_p5, %p2390_p4 }
  0x4c   :  { %2398 = shalt.err (!%p2395_p6)
}
  0x4d   :  { %s2399_s3 = scalar_lea.vmem %s71_s17, 16  ;;  %s2403_s12 = scalar_lea.vmem %s71_s17, 32 }
  0x4e   :  { %p2400_p7 = scmp.ne.s32.totalorder %s71_s17, %s2399_s3  ;;  %p2404_p8 = scmp.lt.s32.totalorder %s71_s17, %s71_s17 }
  0x4f   :  { %p2405_p9 = scmp.lt.s32.totalorder %s2403_s12, %s2399_s3 }
  0x51   :  { %p2406_p10 = por %p2405_p9, %p2404_p8 }
  0x53   :  { %p2407_p11 = pnand %p2406_p10, %p2400_p7 }
  0x55   :  { %2410 = shalt.err (!%p2407_p11)
}
  0x56   :  { %73 = dma.hbm_to_vmem [thread:$0]  %s3897_s4, 16, %s71_s17, [#allocation9]  }
  0x57   :  { %s2474_s8 = smov [#allocation11]   ;;  %s2411_s18 = scalar_lea.hbm %s3898_s5, 32 }
  0x58   :  { %s80_s13 = sshll.u32 %s2474_s8, 4  ;;  %p2412_p12 = scmp.ne.s32.totalorder %s3898_s5, %s2411_s18  ;;  %s81_s13 = int_to_ptr.vmem [resolvable:$true] %s80_s13 }
  0x59   :  { %p2415_p13 = scmp.lt.u32.totalorder %s2411_s18, %s3898_s5 }
  0x5b   :  { %p2417_p0 = pnand %p2415_p13, %p2412_p12 }
  0x5d   :  { %2420 = shalt.err (!%p2417_p0)
}
  0x5e   :  { %s2421_s24 = scalar_lea.vmem %s81_s13, 32  ;;  %p2426_p2 = scmp.lt.s32.totalorder %s81_s13, %s81_s13 }
  0x5f   :  { %p2422_p1 = scmp.ne.s32.totalorder %s81_s13, %s2421_s24  ;;  %p2427_p3 = scmp.lt.s32.totalorder %s2421_s24, %s2421_s24 }
  0x61   :  { %p2428_p4 = por %p2427_p3, %p2426_p2 }
  0x63   :  { %p2429_p5 = pnand %p2428_p4, %p2422_p1 }
  0x65   :  { %2432 = shalt.err (!%p2429_p5)
}
  0x66   :  { %83 = dma.hbm_to_vmem [thread:$0]  %s3898_s5, 32, %s81_s13, [#allocation12]  }
  0x67   :  { %2455 = dma.done.wait [#allocation3], 2048  }
  0x68   :  { %2456 = vsyncadd [#allocation3], 4294965248 }
  0x69   :  { %2457 = dma.done.wait [#allocation6], 5120  }
  0x6a   :  { %2458 = vsyncadd [#allocation6], 4294962176 }
  0x6b   :  { %2459 = dma.done.wait [#allocation9], 2064  }
  0x6c   :  { %2460 = vsyncadd [#allocation9], 4294965232 }
  0x6d   :  { %2461 = dma.done.wait [#allocation12], 32  }
  0x6e   :  { %2462 = vsyncadd [#allocation12], 4294967264  ;;  %v2475_v0 = vmov 0   ;;  %v2061_v1 = vld [vmem:[#allocation7] sm:$0xff]   ;;  %v2065_v4 = vld [vmem:[#allocation7 + $0x8] sm:$0xff]   ;;  %s2476_s5 = smov [#allocation13]  }
  0x6f   :  { %831 = vmatprep.mubr.bf16.mxu1 %v2475_v0  ;;  %v2597_v2 = vld [vmem:[#allocation8 + $0x4] ss:$8 sps:$4 sm:$0xff]   ;;  %2001 = vmatprep.subr.bf16.mxu0 %v2061_v1  ;;  %v2599_v3 = vld [vmem:[#allocation8] ss:$8 sps:$4 sm:$0xff]   ;;  %v2603_v5 = vld [vmem:[#allocation8 + $0x14] ss:$8 sps:$4 sm:$0xff]  }
  0x70   :  { %2033 = vmatprep.subr.bf16.mxu1 %v2597_v2  ;;  %2002 = vmatpush3.bf16.msra.mxu0 %v2061_v1  ;;  %v2605_v6 = vld [vmem:[#allocation8 + $0x10] ss:$8 sps:$4 sm:$0xff]   ;;  %v2608_v8 = vld [vmem:[#allocation8 + $0x24] ss:$8 sps:$4 sm:$0xff]   ;;  %v2610_v9 = vld [vmem:[#allocation8 + $0x20] ss:$8 sps:$4 sm:$0xff]  }
  0x71   :  { %2041 = vmatpush1.bf16.msra.mxu1 %v2599_v3  ;;  %2003 = vmatprep.subr.bf16.mxu0 %v2065_v4  ;;  %v2069_v7 = vld [vmem:[#allocation7 + $0x10] sm:$0xff]   ;;  %v2073_v10 = vld [vmem:[#allocation7 + $0x18] sm:$0xff]   ;;  %v2077_v13 = vld [vmem:[#allocation7 + $0x20] sm:$0xff]   ;;  %s1913_s25 = sshll.u32 %s2476_s5, 4  ;;  %s1914_s25 = int_to_ptr.vmem [resolvable:$true] %s1913_s25 }
  0x72   :  { %2034 = vmatprep.subr.bf16.mxu1 %v2603_v5  ;;  %v2614_v11 = vld [vmem:[#allocation8 + $0x34] ss:$8 sps:$4 sm:$0xff]   ;;  %v2616_v12 = vld [vmem:[#allocation8 + $0x30] ss:$8 sps:$4 sm:$0xff]   ;;  %v2620_v14 = vld [vmem:[#allocation8 + $0x44] ss:$8 sps:$4 sm:$0xff]   ;;  %p2438_p7 = scmp.lt.s32.totalorder %s1914_s25, %s1914_s25 }
  0x73   :  { %v2622_v15 = vld [vmem:[#allocation8 + $0x40] ss:$8 sps:$4 sm:$0xff]   ;;  %v2626_v17 = vld [vmem:[#allocation8 + $0x54] ss:$8 sps:$4 sm:$0xff]   ;;  %v2628_v19 = vld [vmem:[#allocation8 + $0x50] ss:$8 sps:$4 sm:$0xff]  }
  0x74   :  { %2004 = vmatpush3.bf16.msra.mxu0 %v2065_v4  ;;  %v2081_v16 = vld [vmem:[#allocation7 + $0x28] sm:$0xff]   ;;  %v103_v18 = vld [vmem:[#allocation2] sm:$0xff]  ;;  %v2085_v21 = vld [vmem:[#allocation7 + $0x30] sm:$0xff]   ;;  %v377_v4 = vlaneseq  ;;  %s2433_s0 = scalar_lea.vmem %s1914_s25, 2048 }
  0x75   :  { %2042 = vmatpush1.bf16.msra.mxu1 %v2605_v6  ;;  %2005 = vmatprep.subr.bf16.mxu0 %v2069_v7  ;;  %v104_v20 = vld [vmem:[#allocation2 + $0x8] sm:$0xff]  ;;  %v2089_v25 = vld [vmem:[#allocation7 + $0x38] sm:$0xff]   ;;  %v105_v28 = vld [vmem:[#allocation2 + $0x10] sm:$0xff]  ;;  %p2434_p6 = scmp.ne.s32.totalorder %s1914_s25, %s2433_s0  ;;  %p2439_p8 = scmp.lt.s32.totalorder %s2433_s0, %s2433_s0 }
  0x76   :  { %2035 = vmatprep.subr.bf16.mxu1 %v2608_v8  ;;  %v119_v22 = vpack.c.bf16 %v104_v20, %v103_v18  ;;  %v2632_v23 = vld [vmem:[#allocation8 + $0x64] ss:$8 sps:$4 sm:$0xff]   ;;  %v2088_v24 = vld [vmem:[#allocation8 + $0x60] ss:$8 sps:$4 sm:$0xff]   ;;  %v2090_v26 = vld [vmem:[#allocation8 + $0x74] ss:$8 sps:$4 sm:$0xff]  }
  0x77   :  { %v2636_v27 = vld [vmem:[#allocation8 + $0x70] ss:$8 sps:$4 sm:$0xff]   ;;  %v107_v30 = vld [vmem:[#allocation2 + $0x20] sm:$0xff]  ;;  %v108_v31 = vld [vmem:[#allocation2 + $0x28] sm:$0xff]  ;;  %p2440_p9 = por %p2439_p8, %p2438_p7 }
  0x78   :  { %2006 = vmatpush3.bf16.msra.mxu0 %v2069_v7  ;;  %2017 = vmatprep.mubr.bf16.mxu0 %v119_v22  ;;  %v106_v29 = vld [vmem:[#allocation2 + $0x18] sm:$0xff]  ;;  %v2093_v33 = vld [vmem:[#allocation5 + $0x70] sm:$0xff]   ;;  %v121_v34 = vpack.c.bf16 %v108_v31, %v107_v30  ;;  %v111_v37 = vld [vmem:[#allocation2 + $0x40] sm:$0xff] }
  0x79   :  { %2043 = vmatpush1.bf16.msra.mxu1 %v2610_v9  ;;  %2007 = vmatprep.subr.bf16.mxu0 %v2073_v10  ;;  %v120_v32 = vpack.c.bf16 %v106_v29, %v105_v28  ;;  %v109_v35 = vld [vmem:[#allocation2 + $0x30] sm:$0xff]  ;;  %v110_v36 = vld [vmem:[#allocation2 + $0x38] sm:$0xff]  ;;  %v112_v38 = vld [vmem:[#allocation2 + $0x48] sm:$0xff]  ;;  %p2441_p10 = pnand %p2440_p9, %p2434_p6 }
  0x7a   :  { %2036 = vmatprep.subr.bf16.mxu1 %v2614_v11  ;;  %v122_v39 = vpack.c.bf16 %v110_v36, %v109_v35  ;;  %v2094_v40 = vld [vmem:[#allocation5 + $0x78] sm:$0xff]   ;;  %v123_v41 = vpack.c.bf16 %v112_v38, %v111_v37  ;;  %v113_v42 = vld [vmem:[#allocation2 + $0x50] sm:$0xff]  ;;  %v115_v44 = vld [vmem:[#allocation2 + $0x60] sm:$0xff] }
  0x7b   :  { %v114_v43 = vld [vmem:[#allocation2 + $0x58] sm:$0xff]  ;;  %v116_v45 = vld [vmem:[#allocation2 + $0x68] sm:$0xff]  ;;  %v2095_v47 = vld [vmem:[#allocation5 + $0x80] sm:$0xff]  }
  0x7c   :  { %2008 = vmatpush3.bf16.msra.mxu0 %v2073_v10  ;;  %v124_v46 = vpack.c.bf16 %v114_v43, %v113_v42  ;;  %v125_v48 = vpack.c.bf16 %v116_v45, %v115_v44  ;;  %v117_v49 = vld [vmem:[#allocation2 + $0x70] sm:$0xff]  ;;  %v118_v50 = vld [vmem:[#allocation2 + $0x78] sm:$0xff]  ;;  %v2096_v52 = vld [vmem:[#allocation5 + $0x88] sm:$0xff]  }
  0x7d   :  { %2044 = vmatpush1.bf16.msra.mxu1 %v2616_v12  ;;  %2009 = vmatprep.subr.bf16.mxu0 %v2077_v13  ;;  %v126_v51 = vpack.c.bf16 %v118_v50, %v117_v49  ;;  %v2097_v53 = vld [vmem:[#allocation5] sm:$0xff]   ;;  %v2098_v54 = vld [vmem:[#allocation5 + $0x90] sm:$0xff]   ;;  %v2099_v55 = vld [vmem:[#allocation5 + $0x8] sm:$0xff]  }
  0x7e   :  { %2037 = vmatprep.subr.bf16.mxu1 %v2620_v14  ;;  %v2100_v56 = vld [vmem:[#allocation5 + $0x98] sm:$0xff]   ;;  %v2101_v57 = vld [vmem:[#allocation5 + $0x10] sm:$0xff]   ;;  %v2102_v58 = vld [vmem:[#allocation5 + $0xa0] sm:$0xff]  }
  0x7f   :  { %v2103_v59 = vld [vmem:[#allocation5 + $0x18] sm:$0xff]   ;;  %v2104_v60 = vld [vmem:[#allocation5 + $0xa8] sm:$0xff]   ;;  %v2105_v61 = vld [vmem:[#allocation5 + $0x20] sm:$0xff]  }
  0x80   :  { %2010 = vmatpush3.bf16.msra.mxu0 %v2077_v13  ;;  %v2106_v62 = vld [vmem:[#allocation5 + $0xb0] sm:$0xff]   ;;  %v2107_v63 = vld [vmem:[#allocation5 + $0x28] sm:$0xff]   ;;  %v2108_v1 = vld [vmem:[#allocation5 + $0xb8] sm:$0xff]  }
  0x81   :  { %2045 = vmatpush1.bf16.msra.mxu1 %v2622_v15  ;;  %2011 = vmatprep.subr.bf16.mxu0 %v2081_v16  ;;  %v2112_v7 = vld [vmem:[#allocation5 + $0xc8] sm:$0xff]   ;;  %v2122_v20 = vld [vmem:[#allocation5 + $0xf0] sm:$0xff]   ;;  %v2124_v22 = vld [vmem:[#allocation5 + $0xf8] sm:$0xff]  }
  0x82   :  { %2038 = vmatprep.subr.bf16.mxu1 %v2626_v17  ;;  %v2115_v13 = vld [vmem:[#allocation5 + $0x48] sm:$0xff]  }
  0x83   :  { %v2120_v18 = vld [vmem:[#allocation5 + $0xe8] sm:$0xff]  }
  0x84   :  { %2012 = vmatpush3.bf16.msra.mxu0 %v2081_v16  ;;  %v2118_v16 = vld [vmem:[#allocation5 + $0xe0] sm:$0xff]  }
  0x85   :  { %2046 = vmatpush1.bf16.msra.mxu1 %v2628_v19  ;;  %2013 = vmatprep.subr.bf16.mxu0 %v2085_v21 }
  0x86   :  { %2039 = vmatprep.subr.bf16.mxu1 %v2632_v23 }
  0x88   :  { %2014 = vmatpush3.bf16.msra.mxu0 %v2085_v21  ;;  %v2123_v21 = vld [vmem:[#allocation5 + $0x68] sm:$0xff]  }
  0x89   :  { %2047 = vmatpush1.bf16.msra.mxu1 %v2088_v24  ;;  %2015 = vmatprep.subr.bf16.mxu0 %v2089_v25 }
  0x8a   :  { %2040 = vmatprep.subr.bf16.mxu1 %v2090_v26 }
  0x8c   :  { %2016 = vmatpush3.bf16.msra.mxu0 %v2089_v25 }
  0x8d   :  { %2048 = vmatpush1.bf16.msra.mxu1 %v2636_v27  ;;  %659 = vmatprep.subr.bf16.mxu0 %v2597_v2  ;;  %v2109_v2 = vld [vmem:[#allocation5 + $0x30] sm:$0xff]  }
  0x8f   :  { %2018 = vmatmul.mubr.bf16.vlgmr.msra.gmra.mrb[0].mxu0 %v120_v32 }
  0x90   :  { %832 = vmatmul.mubr.bf16.vlgmr.msra.gmra.mrb[0].mxu1 %v2093_v33  ;;  %660 = vmatpush1.bf16.msra.mxu0 %v2599_v3  ;;  %v2110_v3 = vld [vmem:[#allocation5 + $0xc0] sm:$0xff]  }
  0x91   :  { %661 = vmatprep.subr.bf16.mxu0 %v2603_v5  ;;  %2021 = vmatprep.mubr.bf16.mxu0 %v121_v34  ;;  %v2672_v5 = vshrl.u32 %v377_v4, 7 }
  0x92   :  { %841 = vmatprep.mubr.bf16.mxu1 %v2475_v0 }
  0x93   :  { %v379_v37 = vsub.s32 0, %v2672_v5 }
  0x94   :  { %662 = vmatpush1.bf16.msra.mxu0 %v2605_v6  ;;  %v2111_v6 = vld [vmem:[#allocation5 + $0x38] sm:$0xff]  }
  0x95   :  { %663 = vmatprep.subr.bf16.mxu0 %v2608_v8  ;;  %v375_v8 = vld [vmem:[#allocation11] sm:$0x3] }
  0x97   :  { %2022 = vmatmul.mubr.bf16.gmra.mrb[4].mxu0 %v122_v39  ;;  %v2706_v39 = vld [vmem:[#allocation10] ss:$0 sm:$0xff] }
  0x98   :  { %842 = vmatmul.mubr.bf16.gmra.mrb[4].mxu1 %v2094_v40  ;;  %664 = vmatpush1.bf16.msra.mxu0 %v2610_v9  ;;  %v383_v9 = vsub.s32 1, %v2672_v5  ;;  %v2708_v40 = vrot.slane %v375_v8, %v379_v37 }
  0x99   :  { %665 = vmatprep.subr.bf16.mxu0 %v2614_v11  ;;  %2025 = vmatprep.mubr.bf16.mxu0 %v123_v41  ;;  %v2113_v11 = vld [vmem:[#allocation5 + $0x40] sm:$0xff]  }
  0x9a   :  { %851 = vmatprep.mubr.bf16.mxu1 %v2475_v0  ;;  %v2675_v10 = vrot.slane %v375_v8, %v383_v9 }
  0x9c   :  { %666 = vmatpush1.bf16.msra.mxu0 %v2616_v12  ;;  %3933 = vst [vmem:[#allocation19_spill] sm:$0xff] %v2675_v10  ;;  %v2114_v12 = vld [vmem:[#allocation5 + $0xd0] sm:$0xff]  }
  0x9d   :  { %667 = vmatprep.subr.bf16.mxu0 %v2620_v14  ;;  %v2116_v14 = vld [vmem:[#allocation5 + $0xd8] sm:$0xff]  }
  0x9f   :  { %2026 = vmatmul.mubr.bf16.gmra.mrb[8].mxu0 %v124_v46 }
  0xa0   :  { %852 = vmatmul.mubr.bf16.gmra.mrb[8].mxu1 %v2095_v47  ;;  %668 = vmatpush1.bf16.msra.mxu0 %v2622_v15  ;;  %v2117_v15 = vld [vmem:[#allocation5 + $0x50] sm:$0xff]  }
  0xa1   :  { %669 = vmatprep.subr.bf16.mxu0 %v2626_v17  ;;  %2029 = vmatprep.mubr.bf16.mxu0 %v125_v48  ;;  %v2119_v17 = vld [vmem:[#allocation5 + $0x58] sm:$0xff]  }
  0xa2   :  { %861 = vmatprep.mubr.bf16.mxu1 %v2475_v0 }
  0xa4   :  { %670 = vmatpush1.bf16.msra.mxu0 %v2628_v19  ;;  %v2121_v19 = vld [vmem:[#allocation5 + $0x60] sm:$0xff]  }
  0xa5   :  { %671 = vmatprep.subr.bf16.mxu0 %v2632_v23 }
  0xa7   :  { %2030 = vmatmul.mubr.bf16.gmra.mrb[12].mxu0 %v126_v51 }
  0xa8   :  { %862 = vmatmul.mubr.bf16.gmra.mrb[12].mxu1 %v2096_v52  ;;  %672 = vmatpush1.bf16.msra.mxu0 %v2088_v24 }
  0xa9   :  { %673 = vmatprep.subr.bf16.mxu0 %v2090_v26  ;;  %691 = vmatprep.mubr.bf16.mxu0 %v2475_v0 }
  0xaa   :  { %871 = vmatprep.mubr.bf16.mxu1 %v2475_v0 }
  0xac   :  { %674 = vmatpush1.bf16.msra.mxu0 %v2636_v27 }
  0xaf   :  { %692 = vmatmul.mubr.bf16.vlgmr.msra.gmra.mrb[16].mxu0 %v2097_v53 }
  0xb0   :  { %872 = vmatmul.mubr.bf16.gmra.mrb[16].mxu1 %v2098_v54  ;;  %701 = vmatprep.mubr.bf16.mxu0 %v2475_v0 }
  0xb1   :  { %881 = vmatprep.mubr.bf16.mxu1 %v2475_v0 }
  0xb7   :  { %702 = vmatmul.mubr.bf16.gmra.mrb[20].mxu0 %v2099_v55 }
  0xb8   :  { %882 = vmatmul.mubr.bf16.gmra.mrb[20].mxu1 %v2100_v56  ;;  %711 = vmatprep.mubr.bf16.mxu0 %v2475_v0 }
  0xb9   :  { %891 = vmatprep.mubr.bf16.mxu1 %v2475_v0 }
  0xbf   :  { %712 = vmatmul.mubr.bf16.gmra.mrb[24].mxu0 %v2101_v57 }
  0xc0   :  { %892 = vmatmul.mubr.bf16.gmra.mrb[24].mxu1 %v2102_v58  ;;  %721 = vmatprep.mubr.bf16.mxu0 %v2475_v0 }
  0xc1   :  { %901 = vmatprep.mubr.bf16.mxu1 %v2475_v0 }
  0xc7   :  { %722 = vmatmul.mubr.bf16.gmra.mrb[28].mxu0 %v2103_v59 }
  0xc8   :  { %902 = vmatmul.mubr.bf16.gmra.mrb[28].mxu1 %v2104_v60  ;;  %731 = vmatprep.mubr.bf16.mxu0 %v2475_v0 }
  0xc9   :  { %911 = vmatprep.mubr.bf16.mxu1 %v2475_v0 }
  0xcf   :  { %732 = vmatmul.mubr.bf16.gmra.mrb[32].mxu0 %v2105_v61 }
  0xd0   :  { %912 = vmatmul.mubr.bf16.gmra.mrb[32].mxu1 %v2106_v62  ;;  %741 = vmatprep.mubr.bf16.mxu0 %v2475_v0 }
  0xd1   :  { %921 = vmatprep.mubr.bf16.mxu1 %v2475_v0 }
  0xd7   :  { %742 = vmatmul.mubr.bf16.gmra.mrb[36].mxu0 %v2107_v63 }
  0xd8   :  { %922 = vmatmul.mubr.bf16.gmra.mrb[36].mxu1 %v2108_v1  ;;  %751 = vmatprep.mubr.bf16.mxu0 %v2475_v0 }
  0xd9   :  { %931 = vmatprep.mubr.bf16.mxu1 %v2475_v0 }
  0xdf   :  { %752 = vmatmul.mubr.bf16.gmra.mrb[40].mxu0 %v2109_v2 }
  0xe0   :  { %932 = vmatmul.mubr.bf16.gmra.mrb[40].mxu1 %v2110_v3  ;;  %761 = vmatprep.mubr.bf16.mxu0 %v2475_v0 }
  0xe1   :  { %941 = vmatprep.mubr.bf16.mxu1 %v2475_v0 }
  0xe7   :  { %762 = vmatmul.mubr.bf16.gmra.mrb[44].mxu0 %v2111_v6 }
  0xe8   :  { %942 = vmatmul.mubr.bf16.gmra.mrb[44].mxu1 %v2112_v7  ;;  %771 = vmatprep.mubr.bf16.mxu0 %v2475_v0 }
  0xe9   :  { %951 = vmatprep.mubr.bf16.mxu1 %v2475_v0 }
  0xef   :  { %772 = vmatmul.mubr.bf16.gmra.mrb[48].mxu0 %v2113_v11 }
  0xf0   :  { %952 = vmatmul.mubr.bf16.gmra.mrb[48].mxu1 %v2114_v12  ;;  %781 = vmatprep.mubr.bf16.mxu0 %v2475_v0 }
  0xf1   :  { %961 = vmatprep.mubr.bf16.mxu1 %v2475_v0 }
  0xf7   :  { %782 = vmatmul.mubr.bf16.gmra.mrb[52].mxu0 %v2115_v13 }
  0xf8   :  { %962 = vmatmul.mubr.bf16.gmra.mrb[52].mxu1 %v2116_v14  ;;  %791 = vmatprep.mubr.bf16.mxu0 %v2475_v0 }
  0xf9   :  { %971 = vmatprep.mubr.bf16.mxu1 %v2475_v0 }
  0xff   :  { %792 = vmatmul.mubr.bf16.gmra.mrb[56].mxu0 %v2117_v15 }
 0x100   :  { %972 = vmatmul.mubr.bf16.gmra.mrb[56].mxu1 %v2118_v16  ;;  %801 = vmatprep.mubr.bf16.mxu0 %v2475_v0 }
 0x101   :  { %981 = vmatprep.mubr.bf16.mxu1 %v2475_v0 }
 0x107   :  { %802 = vmatmul.mubr.bf16.gmra.mrb[60].mxu0 %v2119_v17 }
 0x108   :  { %982 = vmatmul.mubr.bf16.gmra.mrb[60].mxu1 %v2120_v18  ;;  %811 = vmatprep.mubr.bf16.mxu0 %v2475_v0 }
 0x109   :  { %991 = vmatprep.mubr.bf16.mxu1 %v2475_v0 }
 0x10f   :  { %812 = vmatmul.mubr.bf16.gmra.mrb[64].mxu0 %v2121_v19 }
 0x110   :  { %992 = vmatmul.mubr.bf16.gmra.mrb[64].mxu1 %v2122_v20  ;;  %821 = vmatprep.mubr.bf16.mxu0 %v2475_v0 }
 0x111   :  { %1001 = vmatprep.mubr.bf16.mxu1 %v2475_v0 }
 0x117   :  { %822 = vmatmul.mubr.bf16.gmra.mrb[68].mxu0 %v2123_v21 }
 0x118   :  { %1002 = vmatmul.mubr.bf16.gmra.mrb[68].mxu1 %v2124_v22 }
 0x162   :  { %v2019_v23 = vpop.f32.mrb[0].mxu0 }
 0x163   :  { %v232_v24 = vpop.f32.mrb[1].mxu0  ;;  %v833_v25 = vpop.f32.mrb[0].mxu1  ;;  %v2747_v6 = vadd.f32 %v2019_v23, %v2706_v39 }
 0x164   :  { %v2020_v26 = vpop.f32.mrb[2].mxu0  ;;  %v2689_v27 = vpop.f32.mrb[1].mxu1  ;;  %v2715_v44 = vadd.f32 %v2706_v39, %v232_v24  ;;  %v834_v14 = vadd.f32 %v833_v25, %v2708_v40 }
 0x165   :  { %v235_v28 = vpop.f32.mrb[3].mxu0  ;;  %v837_v29 = vpop.f32.mrb[2].mxu1  ;;  %v2752_v9 = vadd.f32 %v2020_v26, %v2706_v39 }
 0x166   :  { %v2691_v30 = vpop.f32.mrb[3].mxu1  ;;  %v2725_v50 = vadd.f32 %v2706_v39, %v235_v28  ;;  %v838_v21 = vadd.f32 %v837_v29, %v2708_v40 }
 0x167   :  { %3934 = vst [vmem:[#allocation20_spill] sm:$0xff] %v2691_v30 }
 0x16a   :  { %v2693_v31 = vpop.f32.mrb[4].mxu0 }
 0x16b   :  { %v2695_v32 = vpop.f32.mrb[5].mxu0  ;;  %v843_v33 = vpop.f32.mrb[4].mxu1 }
 0x16c   :  { %v2697_v0 = vpop.f32.mrb[6].mxu0  ;;  %v2699_v34 = vpop.f32.mrb[5].mxu1  ;;  %v844_v56 = vadd.f32 %v843_v33, %v2708_v40 }
 0x16d   :  { %3935 = vst [vmem:[#allocation21_spill] sm:$0xff] %v2699_v34  ;;  %v2701_v35 = vpop.f32.mrb[7].mxu0  ;;  %v847_v36 = vpop.f32.mrb[6].mxu1 }
 0x16e   :  { %v2704_v38 = vpop.f32.mrb[7].mxu1  ;;  %v848_v62 = vadd.f32 %v847_v36, %v2708_v40  ;;  %v2778_v36 = vadd.f32 %v2706_v39, %v2701_v35 }
 0x16f   :  { %3936 = vst [vmem:[#allocation22_spill] sm:$0xff] %v2704_v38 }
 0x172   :  { %v2710_v41 = vpop.f32.mrb[8].mxu0 }
 0x173   :  { %v853_v42 = vpop.f32.mrb[8].mxu1  ;;  %v2712_v43 = vpop.f32.mrb[9].mxu0 }
 0x174   :  { %v854_v45 = vadd.f32 %v853_v42, %v2708_v40  ;;  %v2718_v46 = vpop.f32.mrb[9].mxu1  ;;  %v2720_v47 = vpop.f32.mrb[10].mxu0 }
 0x175   :  { %v857_v48 = vpop.f32.mrb[10].mxu1  ;;  %v2722_v49 = vpop.f32.mrb[11].mxu0 }
 0x176   :  { %v858_v51 = vadd.f32 %v857_v48, %v2708_v40  ;;  %v2728_v52 = vpop.f32.mrb[11].mxu1  ;;  %v1108_v53 = vmul.f32 %v854_v45, %v2715_v44  ;;  %v2784_v45 = vadd.f32 %v2706_v39, %v2695_v32 }
 0x178   :  { %1124 = vadd.xlane.f32.xlu0 %v1108_v53  ;;  %v1109_v54 = vmul.f32 %v858_v51, %v2725_v50 }
 0x17a   :  { %1126 = vadd.xlane.f32.xlu1 %v1109_v54  ;;  %v2031_v55 = vpop.f32.mrb[12].mxu0 }
 0x17b   :  { %v2734_v57 = vadd.f32 %v2031_v55, %v2706_v39  ;;  %v863_v58 = vpop.f32.mrb[12].mxu1  ;;  %v280_v59 = vpop.f32.mrb[13].mxu0 }
 0x17c   :  { %v2736_v60 = vpop.f32.mrb[13].mxu1  ;;  %v2032_v61 = vpop.f32.mrb[14].mxu0  ;;  %v864_v63 = vadd.f32 %v863_v58, %v2708_v40  ;;  %v2755_v11 = vadd.f32 %v2706_v39, %v280_v59 }
 0x17d   :  { %v2741_v1 = vadd.f32 %v2032_v61, %v2706_v39  ;;  %v867_v2 = vpop.f32.mrb[14].mxu1  ;;  %v283_v3 = vpop.f32.mrb[15].mxu0  ;;  %v1074_v4 = vmul.f32 %v844_v56, %v2734_v57 }
 0x17e   :  { %v2744_v5 = vpop.f32.mrb[15].mxu1  ;;  %v868_v7 = vadd.f32 %v867_v2, %v2708_v40  ;;  %v1110_v12 = vmul.f32 %v864_v63, %v2747_v6  ;;  %v2760_v15 = vadd.f32 %v2706_v39, %v283_v3  ;;  %v1072_v25 = vmul.f32 %v834_v14, %v2755_v11 }
 0x17f   :  { %1104 = vadd.xlane.f32.xlu0 %v1074_v4  ;;  %v1075_v8 = vmul.f32 %v848_v62, %v2741_v1 }
 0x180   :  { %v1111_v18 = vmul.f32 %v868_v7, %v2752_v9  ;;  %v1073_v33 = vmul.f32 %v838_v21, %v2760_v15  ;;  %v2804_v7 = vadd.f32 %v2693_v31, %v2706_v39 }
 0x181   :  { %1106 = vadd.xlane.f32.xlu1 %v1075_v8 }
 0x182   :  { %v693_v13 = vpop.f32.mrb[16].mxu0 }
 0x183   :  { %v873_v16 = vpop.f32.mrb[16].mxu1  ;;  %v2762_v17 = vpop.f32.mrb[17].mxu0  ;;  %1128 = vadd.xlane.f32.xlu0 %v1110_v12  ;;  %v694_v22 = vadd.f32 %v693_v13, %v2708_v40 }
 0x184   :  { %v2765_v19 = vpop.f32.mrb[17].mxu1  ;;  %v697_v20 = vpop.f32.mrb[18].mxu0  ;;  %v874_v29 = vadd.f32 %v873_v16, %v2708_v40 }
 0x185   :  { %v877_v23 = vpop.f32.mrb[18].mxu1  ;;  %v2769_v24 = vpop.f32.mrb[19].mxu0  ;;  %1130 = vadd.xlane.f32.xlu1 %v1111_v18  ;;  %v1012_v37 = vmul.f32 %v694_v22, %v2715_v44  ;;  %v698_v56 = vadd.f32 %v697_v20, %v2708_v40  ;;  %v2814_v20 = vadd.f32 %v2697_v0, %v2706_v39 }
 0x186   :  { %v2772_v26 = vpop.f32.mrb[19].mxu1  ;;  %v878_v28 = vadd.f32 %v877_v23, %v2708_v40  ;;  %v1112_v32 = vmul.f32 %v874_v29, %v2784_v45 }
 0x187   :  { %1100 = vadd.xlane.f32.xlu0 %v1072_v25  ;;  %v1013_v3 = vmul.f32 %v698_v56, %v2725_v50 }
 0x188   :  { %v1113_v54 = vmul.f32 %v878_v28, %v2778_v36 }
 0x189   :  { %1102 = vadd.xlane.f32.xlu1 %v1073_v33 }
 0x18a   :  { %v703_v42 = vpop.f32.mrb[20].mxu0 }
 0x18b   :  { %v704_v48 = vadd.f32 %v703_v42, %v2708_v40  ;;  %v883_v51 = vpop.f32.mrb[20].mxu1  ;;  %v2787_v53 = vpop.f32.mrb[21].mxu0  ;;  %1028 = vadd.xlane.f32.xlu0 %v1012_v37  ;;  %v2828_v42 = vadd.f32 %v2706_v39, %v2712_v43 }
 0x18c   :  { %v2790_v35 = vpop.f32.mrb[21].mxu1  ;;  %v707_v55 = vpop.f32.mrb[22].mxu0  ;;  %v884_v2 = vadd.f32 %v883_v51, %v2708_v40 }
 0x18d   :  { %v887_v58 = vpop.f32.mrb[22].mxu1  ;;  %v2793_v59 = vpop.f32.mrb[23].mxu0  ;;  %1134 = vadd.xlane.f32.xlu1 %v1113_v54  ;;  %v708_v62 = vadd.f32 %v707_v55, %v2708_v40  ;;  %v1014_v63 = vmul.f32 %v704_v48, %v2747_v6 }
 0x18e   :  { %v2796_v61 = vpop.f32.mrb[23].mxu1  ;;  %v888_v8 = vadd.f32 %v887_v58, %v2708_v40  ;;  %v1114_v23 = vmul.f32 %v884_v2, %v2804_v7 }
 0x18f   :  { %1132 = vadd.xlane.f32.xlu0 %v1112_v32  ;;  %v1015_v14 = vmul.f32 %v708_v62, %v2752_v9  ;;  %v2838_v32 = vadd.f32 %v2706_v39, %v2722_v49 }
 0x190   :  { %v1115_v33 = vmul.f32 %v888_v8, %v2814_v20 }
 0x191   :  { %1032 = vadd.xlane.f32.xlu1 %v1014_v63 }
 0x192   :  { %v713_v4 = vpop.f32.mrb[24].mxu0 }
 0x193   :  { %v893_v12 = vpop.f32.mrb[24].mxu1  ;;  %v2807_v13 = vpop.f32.mrb[25].mxu0  ;;  %1030 = vadd.xlane.f32.xlu0 %v1013_v3  ;;  %v714_v21 = vadd.f32 %v713_v4, %v2708_v40 }
 0x194   :  { %v2810_v16 = vpop.f32.mrb[25].mxu1  ;;  %v717_v18 = vpop.f32.mrb[26].mxu0  ;;  %v894_v29 = vadd.f32 %v893_v12, %v2708_v40 }
 0x195   :  { %v897_v22 = vpop.f32.mrb[26].mxu1  ;;  %1034 = vadd.xlane.f32.xlu1 %v1015_v14  ;;  %v2817_v31 = vpop.f32.mrb[27].mxu0  ;;  %v718_v28 = vadd.f32 %v717_v18, %v2708_v40  ;;  %v1016_v0 = vmul.f32 %v714_v21, %v2784_v45  ;;  %v2852_v18 = vadd.f32 %v2710_v41, %v2706_v39 }
 0x196   :  { %v2820_v25 = vpop.f32.mrb[27].mxu1  ;;  %v898_v48 = vadd.f32 %v897_v22, %v2708_v40  ;;  %v1116_v2 = vmul.f32 %v894_v29, %v2828_v42 }
 0x197   :  { %1136 = vadd.xlane.f32.xlu0 %v1114_v23  ;;  %v1017_v55 = vmul.f32 %v718_v28, %v2778_v36 }
 0x198   :  { %v1117_v8 = vmul.f32 %v898_v48, %v2838_v32 }
 0x199   :  { %1138 = vadd.xlane.f32.xlu1 %v1115_v33 }
 0x19a   :  { %v723_v37 = vpop.f32.mrb[28].mxu0 }
 0x19b   :  { %v903_v51 = vpop.f32.mrb[28].mxu1  ;;  %v2831_v54 = vpop.f32.mrb[29].mxu0  ;;  %1036 = vadd.xlane.f32.xlu0 %v1016_v0  ;;  %v724_v62 = vadd.f32 %v723_v37, %v2708_v40  ;;  %v2862_v0 = vadd.f32 %v2720_v47, %v2706_v39 }
 0x19c   :  { %v2834_v56 = vpop.f32.mrb[29].mxu1  ;;  %v727_v58 = vpop.f32.mrb[30].mxu0  ;;  %v904_v12 = vadd.f32 %v903_v51, %v2708_v40 }
 0x19d   :  { %3937 = vst [vmem:[#allocation23_spill] sm:$0xff] %v2834_v56  ;;  %v907_v63 = vpop.f32.mrb[30].mxu1  ;;  %1038 = vadd.xlane.f32.xlu1 %v1017_v55  ;;  %v2841_v43 = vpop.f32.mrb[31].mxu0  ;;  %v728_v4 = vadd.f32 %v727_v58, %v2708_v40  ;;  %v1018_v49 = vmul.f32 %v724_v62, %v2804_v7 }
 0x19e   :  { %v2844_v3 = vpop.f32.mrb[31].mxu1  ;;  %v908_v21 = vadd.f32 %v907_v63, %v2708_v40  ;;  %v1118_v51 = vmul.f32 %v904_v12, %v2852_v18 }
 0x19f   :  { %3938 = vst [vmem:[#allocation24_spill] sm:$0xff] %v2844_v3  ;;  %1140 = vadd.xlane.f32.xlu0 %v1116_v2  ;;  %v1019_v28 = vmul.f32 %v728_v4, %v2814_v20 }
 0x1a0   :  { %v1119_v62 = vmul.f32 %v908_v21, %v2862_v0 }
 0x1a1   :  { %1142 = vadd.xlane.f32.xlu1 %v1117_v8 }
 0x1a2   :  { %v733_v14 = vpop.f32.mrb[32].mxu0 }
 0x1a3   :  { %v913_v22 = vpop.f32.mrb[32].mxu1  ;;  %v2855_v23 = vpop.f32.mrb[33].mxu0  ;;  %1040 = vadd.xlane.f32.xlu0 %v1018_v49  ;;  %v734_v37 = vadd.f32 %v733_v14, %v2708_v40 }
 0x1a4   :  { %v2858_v33 = vpop.f32.mrb[33].mxu1  ;;  %v737_v29 = vpop.f32.mrb[34].mxu0  ;;  %v914_v63 = vadd.f32 %v913_v22, %v2708_v40 }
 0x1a5   :  { %v917_v48 = vpop.f32.mrb[34].mxu1  ;;  %1042 = vadd.xlane.f32.xlu1 %v1019_v28  ;;  %v2865_v41 = vpop.f32.mrb[35].mxu0  ;;  %v738_v58 = vadd.f32 %v737_v29, %v2708_v40  ;;  %v1020_v39 = vmul.f32 %v734_v37, %v2828_v42 }
 0x1a6   :  { %v2868_v55 = vpop.f32.mrb[35].mxu1  ;;  %v918_v2 = vadd.f32 %v917_v48, %v2708_v40  ;;  %v1120_v29 = vmul.f32 %v914_v63, %v2755_v11 }
 0x1a7   :  { %3939 = vst [vmem:[#allocation25_spill] sm:$0xff] %v2868_v55  ;;  %1144 = vadd.xlane.f32.xlu0 %v1118_v51  ;;  %v1021_v12 = vmul.f32 %v738_v58, %v2838_v32 }
 0x1a8   :  { %v1121_v51 = vmul.f32 %v918_v2, %v2760_v15 }
 0x1a9   :  { %1146 = vadd.xlane.f32.xlu1 %v1119_v62 }
 0x1aa   :  { %v743_v47 = vpop.f32.mrb[36].mxu0 }
 0x1ab   :  { %v923_v4 = vpop.f32.mrb[36].mxu1  ;;  %v2875_v8 = vpop.f32.mrb[37].mxu0  ;;  %1044 = vadd.xlane.f32.xlu0 %v1020_v39  ;;  %v744_v28 = vadd.f32 %v743_v47, %v2708_v40 }
 0x1ac   :  { %3940 = vst [vmem:[#allocation26_spill] sm:$0xff] %v2875_v8  ;;  %v2878_v49 = vpop.f32.mrb[37].mxu1  ;;  %v747_v14 = vpop.f32.mrb[38].mxu0  ;;  %v924_v58 = vadd.f32 %v923_v4, %v2708_v40 }
 0x1ad   :  { %3941 = vst [vmem:[#allocation27_spill] sm:$0xff] %v2878_v49  ;;  %v927_v21 = vpop.f32.mrb[38].mxu1  ;;  %1046 = vadd.xlane.f32.xlu1 %v1021_v12  ;;  %v2881_v22 = vpop.f32.mrb[39].mxu0  ;;  %v748_v48 = vadd.f32 %v747_v14, %v2708_v40  ;;  %v1022_v62 = vmul.f32 %v744_v28, %v2852_v18 }
 0x1ae   :  { %3942 = vst [vmem:[#allocation28_spill] sm:$0xff] %v2881_v22  ;;  %v2884_v37 = vpop.f32.mrb[39].mxu1  ;;  %v928_v47 = vadd.f32 %v927_v21, %v2708_v40  ;;  %v1122_v28 = vmul.f32 %v924_v58, %v2734_v57 }
 0x1af   :  { %3943 = vst [vmem:[#allocation29_spill] sm:$0xff] %v2884_v37  ;;  %1148 = vadd.xlane.f32.xlu0 %v1120_v29  ;;  %v1023_v63 = vmul.f32 %v748_v48, %v2862_v0 }
 0x1b1   :  { %1150 = vadd.xlane.f32.xlu1 %v1121_v51 }
 0x1b2   :  { %v753_v39 = vpop.f32.mrb[40].mxu0 }
 0x1b3   :  { %v933_v12 = vpop.f32.mrb[40].mxu1  ;;  %v2891_v38 = vpop.f32.mrb[41].mxu0  ;;  %1048 = vadd.xlane.f32.xlu0 %v1022_v62  ;;  %v754_v29 = vadd.f32 %v753_v39, %v2708_v40  ;;  %v1123_v62 = vmul.f32 %v928_v47, %v2741_v1 }
 0x1b4   :  { %v2894_v37 = vpop.f32.mrb[41].mxu1  ;;  %v757_v14 = vpop.f32.mrb[42].mxu0  ;;  %v934_v48 = vadd.f32 %v933_v12, %v2708_v40 }
 0x1b5   :  { %v937_v2 = vpop.f32.mrb[42].mxu1  ;;  %1050 = vadd.xlane.f32.xlu1 %v1023_v63  ;;  %v2897_v4 = vpop.f32.mrb[43].mxu0  ;;  %v758_v21 = vadd.f32 %v757_v14, %v2708_v40  ;;  %v1024_v49 = vmul.f32 %v754_v29, %v2755_v11 }
 0x1b6   :  { %3944 = vst [vmem:[#allocation30_spill] sm:$0xff] %v2897_v4  ;;  %v2900_v51 = vpop.f32.mrb[43].mxu1  ;;  %v938_v39 = vadd.f32 %v937_v2, %v2708_v40  ;;  %v1156_v29 = vmul.f32 %v934_v48, %v2715_v44 }
 0x1b7   :  { %1152 = vadd.xlane.f32.xlu0 %v1122_v28  ;;  %v1025_v58 = vmul.f32 %v758_v21, %v2760_v15 }
 0x1b9   :  { %1154 = vadd.xlane.f32.xlu1 %v1123_v62 }
 0x1ba   :  { %v763_v34 = vpop.f32.mrb[44].mxu0 }
 0x1bb   :  { %v943_v63 = vpop.f32.mrb[44].mxu1  ;;  %v2907_v3 = vpop.f32.mrb[45].mxu0  ;;  %1052 = vadd.xlane.f32.xlu0 %v1024_v49  ;;  %v764_v28 = vadd.f32 %v763_v34, %v2708_v40  ;;  %v1157_v49 = vmul.f32 %v938_v39, %v2725_v50 }
 0x1bc   :  { %3945 = vst [vmem:[#allocation31_spill] sm:$0xff] %v2907_v3  ;;  %v2910_v22 = vpop.f32.mrb[45].mxu1  ;;  %v767_v14 = vpop.f32.mrb[46].mxu0  ;;  %v944_v21 = vadd.f32 %v943_v63, %v2708_v40 }
 0x1bd   :  { %v947_v47 = vpop.f32.mrb[46].mxu1  ;;  %1054 = vadd.xlane.f32.xlu1 %v1025_v58  ;;  %v2913_v12 = vpop.f32.mrb[47].mxu0  ;;  %v768_v2 = vadd.f32 %v767_v14, %v2708_v40  ;;  %v1026_v3 = vmul.f32 %v764_v28, %v2734_v57 }
 0x1be   :  { %3946 = vst [vmem:[#allocation32_spill] sm:$0xff] %v2913_v12  ;;  %v2916_v62 = vpop.f32.mrb[47].mxu1  ;;  %v948_v34 = vadd.f32 %v947_v47, %v2708_v40  ;;  %v1158_v28 = vmul.f32 %v944_v21, %v2747_v6 }
 0x1bf   :  { %1172 = vadd.xlane.f32.xlu0 %v1156_v29  ;;  %v1027_v48 = vmul.f32 %v768_v2, %v2741_v1 }
 0x1c1   :  { %1174 = vadd.xlane.f32.xlu1 %v1157_v49 }
 0x1c2   :  { %v773_v56 = vpop.f32.mrb[48].mxu0 }
 0x1c3   :  { %v953_v58 = vpop.f32.mrb[48].mxu1  ;;  %v2923_v8 = vpop.f32.mrb[49].mxu0  ;;  %1056 = vadd.xlane.f32.xlu0 %v1026_v3  ;;  %v774_v29 = vadd.f32 %v773_v56, %v2708_v40  ;;  %v1159_v3 = vmul.f32 %v948_v34, %v2752_v9 }
 0x1c4   :  { %v2926_v12 = vpop.f32.mrb[49].mxu1  ;;  %v777_v14 = vpop.f32.mrb[50].mxu0  ;;  %v954_v2 = vadd.f32 %v953_v58, %v2708_v40 }
 0x1c5   :  { %v957_v39 = vpop.f32.mrb[50].mxu1  ;;  %1058 = vadd.xlane.f32.xlu1 %v1027_v48  ;;  %v2929_v63 = vpop.f32.mrb[51].mxu0  ;;  %v778_v47 = vadd.f32 %v777_v14, %v2708_v40  ;;  %v1060_v4 = vmul.f32 %v774_v29, %v2715_v44 }
 0x1c6   :  { %v2932_v49 = vpop.f32.mrb[51].mxu1  ;;  %v958_v56 = vadd.f32 %v957_v39, %v2708_v40  ;;  %v1160_v44 = vmul.f32 %v954_v2, %v2784_v45 }
 0x1c7   :  { %3947 = vst [vmem:[#allocation33_spill] sm:$0xff] %v2932_v49  ;;  %1176 = vadd.xlane.f32.xlu0 %v1158_v28  ;;  %v1061_v21 = vmul.f32 %v778_v47, %v2725_v50 }
 0x1c9   :  { %1178 = vadd.xlane.f32.xlu1 %v1159_v3 }
 0x1ca   :  { %v783_v55 = vpop.f32.mrb[52].mxu0 }
 0x1cb   :  { %v963_v48 = vpop.f32.mrb[52].mxu1  ;;  %v2939_v30 = vpop.f32.mrb[53].mxu0  ;;  %1076 = vadd.xlane.f32.xlu0 %v1060_v4  ;;  %v784_v28 = vadd.f32 %v783_v55, %v2708_v40  ;;  %v1161_v4 = vmul.f32 %v958_v56, %v2778_v36 }
 0x1cc   :  { %v2942_v49 = vpop.f32.mrb[53].mxu1  ;;  %v787_v14 = vpop.f32.mrb[54].mxu0  ;;  %v964_v50 = vadd.f32 %v963_v48, %v2708_v40 }
 0x1cd   :  { %3948 = vst [vmem:[#allocation34_spill] sm:$0xff] %v2942_v49  ;;  %v967_v34 = vpop.f32.mrb[54].mxu1  ;;  %1078 = vadd.xlane.f32.xlu1 %v1061_v21  ;;  %v2945_v58 = vpop.f32.mrb[55].mxu0  ;;  %v788_v39 = vadd.f32 %v787_v14, %v2708_v40  ;;  %v1062_v47 = vmul.f32 %v784_v28, %v2747_v6 }
 0x1ce   :  { %v2948_v29 = vpop.f32.mrb[55].mxu1  ;;  %v968_v55 = vadd.f32 %v967_v34, %v2708_v40  ;;  %v1162_v6 = vmul.f32 %v964_v50, %v2804_v7 }
 0x1cf   :  { %3949 = vst [vmem:[#allocation35_spill] sm:$0xff] %v2948_v29  ;;  %1180 = vadd.xlane.f32.xlu0 %v1160_v44  ;;  %v1063_v2 = vmul.f32 %v788_v39, %v2752_v9 }
 0x1d1   :  { %1182 = vadd.xlane.f32.xlu1 %v1161_v4  ;;  %v1163_v4 = vmul.f32 %v968_v55, %v2814_v20 }
 0x1d2   :  { %v793_v3 = vpop.f32.mrb[56].mxu0 }
 0x1d3   :  { %v973_v21 = vpop.f32.mrb[56].mxu1  ;;  %v2955_v49 = vpop.f32.mrb[57].mxu0  ;;  %1080 = vadd.xlane.f32.xlu0 %v1062_v47  ;;  %v794_v44 = vadd.f32 %v793_v3, %v2708_v40 }
 0x1d4   :  { %v2958_v29 = vpop.f32.mrb[57].mxu1  ;;  %v797_v14 = vpop.f32.mrb[58].mxu0  ;;  %v974_v9 = vadd.f32 %v973_v21, %v2708_v40 }
 0x1d5   :  { %3950 = vst [vmem:[#allocation36_spill] sm:$0xff] %v2958_v29  ;;  %v977_v56 = vpop.f32.mrb[58].mxu1  ;;  %1082 = vadd.xlane.f32.xlu1 %v1063_v2  ;;  %v2961_v48 = vpop.f32.mrb[59].mxu0  ;;  %v798_v34 = vadd.f32 %v797_v14, %v2708_v40  ;;  %v1064_v39 = vmul.f32 %v794_v44, %v2784_v45 }
 0x1d6   :  { %v2964_v28 = vpop.f32.mrb[59].mxu1  ;;  %v978_v3 = vadd.f32 %v977_v56, %v2708_v40  ;;  %v1164_v45 = vmul.f32 %v974_v9, %v2828_v42 }
 0x1d7   :  { %3951 = vst [vmem:[#allocation37_spill] sm:$0xff] %v2964_v28  ;;  %1184 = vadd.xlane.f32.xlu0 %v1162_v6  ;;  %v1065_v50 = vmul.f32 %v798_v34, %v2778_v36 }
 0x1d9   :  { %1186 = vadd.xlane.f32.xlu1 %v1163_v4  ;;  %v1165_v4 = vmul.f32 %v978_v3, %v2838_v32 }
 0x1da   :  { %v803_v47 = vpop.f32.mrb[60].mxu0 }
 0x1db   :  { %v983_v2 = vpop.f32.mrb[60].mxu1  ;;  %v2971_v29 = vpop.f32.mrb[61].mxu0  ;;  %1084 = vadd.xlane.f32.xlu0 %v1064_v39  ;;  %v804_v6 = vadd.f32 %v803_v47, %v2708_v40 }
 0x1dc   :  { %v2974_v28 = vpop.f32.mrb[61].mxu1  ;;  %v807_v14 = vpop.f32.mrb[62].mxu0  ;;  %v984_v36 = vadd.f32 %v983_v2, %v2708_v40 }
 0x1dd   :  { %3952 = vst [vmem:[#allocation38_spill] sm:$0xff] %v2974_v28  ;;  %v987_v55 = vpop.f32.mrb[62].mxu1  ;;  %1086 = vadd.xlane.f32.xlu1 %v1065_v50  ;;  %v2977_v21 = vpop.f32.mrb[63].mxu0  ;;  %v808_v56 = vadd.f32 %v807_v14, %v2708_v40  ;;  %v1066_v34 = vmul.f32 %v804_v6, %v2804_v7 }
 0x1de   :  { %v2980_v44 = vpop.f32.mrb[63].mxu1  ;;  %v988_v47 = vadd.f32 %v987_v55, %v2708_v40  ;;  %v1166_v7 = vmul.f32 %v984_v36, %v2852_v18 }
 0x1df   :  { %3953 = vst [vmem:[#allocation39_spill] sm:$0xff] %v2980_v44  ;;  %1188 = vadd.xlane.f32.xlu0 %v1164_v45  ;;  %v1067_v9 = vmul.f32 %v808_v56, %v2814_v20 }
 0x1e1   :  { %1190 = vadd.xlane.f32.xlu1 %v1165_v4  ;;  %v1167_v4 = vmul.f32 %v988_v47, %v2862_v0 }
 0x1e2   :  { %v813_v39 = vpop.f32.mrb[64].mxu0 }
 0x1e3   :  { %v993_v50 = vpop.f32.mrb[64].mxu1  ;;  %v2987_v28 = vpop.f32.mrb[65].mxu0  ;;  %1088 = vadd.xlane.f32.xlu0 %v1066_v34  ;;  %v814_v45 = vadd.f32 %v813_v39, %v2708_v40 }
 0x1e4   :  { %v2990_v44 = vpop.f32.mrb[65].mxu1  ;;  %v817_v14 = vpop.f32.mrb[66].mxu0  ;;  %v994_v20 = vadd.f32 %v993_v50, %v2708_v40 }
 0x1e5   :  { %3954 = vst [vmem:[#allocation40_spill] sm:$0xff] %v2990_v44  ;;  %v997_v3 = vpop.f32.mrb[66].mxu1  ;;  %1090 = vadd.xlane.f32.xlu1 %v1067_v9  ;;  %v2993_v2 = vpop.f32.mrb[67].mxu0  ;;  %v818_v55 = vadd.f32 %v817_v14, %v2708_v40  ;;  %v1068_v56 = vmul.f32 %v814_v45, %v2828_v42 }
 0x1e6   :  { %v2996_v6 = vpop.f32.mrb[67].mxu1  ;;  %v998_v39 = vadd.f32 %v997_v3, %v2708_v40  ;;  %v1168_v42 = vmul.f32 %v994_v20, %v2755_v11 }
 0x1e7   :  { %3955 = vst [vmem:[#allocation41_spill] sm:$0xff] %v2996_v6  ;;  %1192 = vadd.xlane.f32.xlu0 %v1166_v7  ;;  %v1069_v36 = vmul.f32 %v818_v55, %v2838_v32 }
 0x1e9   :  { %1194 = vadd.xlane.f32.xlu1 %v1167_v4  ;;  %v1169_v4 = vmul.f32 %v998_v39, %v2760_v15 }
 0x1ea   :  { %v823_v34 = vpop.f32.mrb[68].mxu0 }
 0x1eb   :  { %v1003_v9 = vpop.f32.mrb[68].mxu1  ;;  %v3003_v44 = vpop.f32.mrb[69].mxu0  ;;  %1092 = vadd.xlane.f32.xlu0 %v1068_v56  ;;  %v824_v7 = vadd.f32 %v823_v34, %v2708_v40 }
 0x1ec   :  { %3956 = vst [vmem:[#allocation42_spill] sm:$0xff] %v3003_v44  ;;  %v3006_v6 = vpop.f32.mrb[69].mxu1  ;;  %v827_v14 = vpop.f32.mrb[70].mxu0  ;;  %v1004_v32 = vadd.f32 %v1003_v9, %v2708_v40 }
 0x1ed   :  { %3957 = vst [vmem:[#allocation43_spill] sm:$0xff] %v3006_v6  ;;  %v1007_v47 = vpop.f32.mrb[70].mxu1  ;;  %1094 = vadd.xlane.f32.xlu1 %v1069_v36  ;;  %v3009_v50 = vpop.f32.mrb[71].mxu0  ;;  %v828_v3 = vadd.f32 %v827_v14, %v2708_v40  ;;  %v1070_v55 = vmul.f32 %v824_v7, %v2852_v18 }
 0x1ee   :  { %3958 = vst [vmem:[#allocation44_spill] sm:$0xff] %v3009_v50  ;;  %v3012_v45 = vpop.f32.mrb[71].mxu1  ;;  %v1008_v56 = vadd.f32 %v1007_v47, %v2708_v40  ;;  %v1170_v11 = vmul.f32 %v1004_v32, %v2734_v57 }
 0x1ef   :  { %3959 = vst [vmem:[#allocation45_spill] sm:$0xff] %v3012_v45  ;;  %1196 = vadd.xlane.f32.xlu0 %v1168_v42  ;;  %v1071_v34 = vmul.f32 %v828_v3, %v2862_v0 }
 0x1f0   :  { %v1171_v20 = vmul.f32 %v1008_v56, %v2741_v1 }
 0x1f1   :  { %1198 = vadd.xlane.f32.xlu1 %v1169_v4 }
 0x1f3   :  { %1096 = vadd.xlane.f32.xlu0 %v1070_v55 }
 0x1f5   :  { %1098 = vadd.xlane.f32.xlu1 %v1071_v34 }
 0x1f7   :  { %1200 = vadd.xlane.f32.xlu0 %v1170_v11 }
 0x1f9   :  { %1202 = vadd.xlane.f32.xlu1 %v1171_v20 }
 0x205   :  { %v3022_v36 = vpop.xlane.xlu0 %1124 }
 0x207   :  { %v3024_v15 = vpop.xlane.xlu1 %1126 }
 0x20c   :  { %v3026_v39 = vpop.xlane.xlu0 %1104 }
 0x20d   :  { %3960 = vst [vmem:[#allocation46_spill] sm:$0xff] %v3026_v39 }
 0x20e   :  { %v3028_v9 = vpop.xlane.xlu1 %1106 }
 0x20f   :  { %3961 = vst [vmem:[#allocation47_spill] sm:$0xff] %v3028_v9 }
 0x210   :  { %v3030_v18 = vpop.xlane.xlu0 %1128 }
 0x212   :  { %v3032_v40 = vpop.xlane.xlu1 %1130 }
 0x214   :  { %v3034_v0 = vpop.xlane.xlu0 %1100 }
 0x215   :  { %3962 = vst [vmem:[#allocation48_spill] sm:$0xff] %v3034_v0 }
 0x216   :  { %v3036_v14 = vpop.xlane.xlu1 %1102 }
 0x217   :  { %3963 = vst [vmem:[#allocation49_spill] sm:$0xff] %v3036_v14 }
 0x218   :  { %v3038_v57 = vpop.xlane.xlu0 %1028 }
 0x21a   :  { %v3040_v1 = vpop.xlane.xlu1 %1134 }
 0x21b   :  { %3964 = vst [vmem:[#allocation50_spill] sm:$0xff] %v3040_v1 }
 0x21c   :  { %v3042_v7 = vpop.xlane.xlu0 %1132 }
 0x21d   :  { %3965 = vst [vmem:[#allocation51_spill] sm:$0xff] %v3042_v7 }
 0x21e   :  { %v3044_v47 = vpop.xlane.xlu1 %1032 }
 0x220   :  { %v3046_v42 = vpop.xlane.xlu0 %1030 }
 0x222   :  { %v3048_v3 = vpop.xlane.xlu1 %1034 }
 0x224   :  { %v3050_v4 = vpop.xlane.xlu0 %1136 }
 0x225   :  { %3966 = vst [vmem:[#allocation52_spill] sm:$0xff] %v3050_v4 }
 0x226   :  { %v3052_v32 = vpop.xlane.xlu1 %1138 }
 0x227   :  { %3967 = vst [vmem:[#allocation53_spill] sm:$0xff] %v3052_v32 }
 0x228   :  { %v3054_v55 = vpop.xlane.xlu0 %1036 }
 0x22a   :  { %v3056_v56 = vpop.xlane.xlu1 %1038 }
 0x22b   :  { %3968 = vst [vmem:[#allocation54_spill] sm:$0xff] %v3056_v56 }
 0x22c   :  { %v3058_v34 = vpop.xlane.xlu0 %1140 }
 0x22d   :  { %3969 = vst [vmem:[#allocation55_spill] sm:$0xff] %v3058_v34 }
 0x22e   :  { %v3060_v11 = vpop.xlane.xlu1 %1142 }
 0x22f   :  { %3970 = vst [vmem:[#allocation56_spill] sm:$0xff] %v3060_v11 }
 0x230   :  { %v3062_v20 = vpop.xlane.xlu0 %1040 }
 0x231   :  { %3971 = vst [vmem:[#allocation57_spill] sm:$0xff] %v3062_v20 }
 0x232   :  { %v3064_v45 = vpop.xlane.xlu1 %1042 }
 0x233   :  { %3972 = vst [vmem:[#allocation58_spill] sm:$0xff] %v3064_v45 }
 0x234   :  { %v3066_v6 = vpop.xlane.xlu0 %1144 }
 0x235   :  { %3973 = vst [vmem:[#allocation59_spill] sm:$0xff] %v3066_v6 }
 0x236   :  { %v3068_v50 = vpop.xlane.xlu1 %1146 }
 0x237   :  { %3974 = vst [vmem:[#allocation60_spill] sm:$0xff] %v3068_v50 }
 0x238   :  { %v3070_v44 = vpop.xlane.xlu0 %1044 }
 0x239   :  { %3975 = vst [vmem:[#allocation61_spill] sm:$0xff] %v3070_v44 }
 0x23a   :  { %v3072_v4 = vpop.xlane.xlu1 %1046 }
 0x23b   :  { %3976 = vst [vmem:[#allocation62_spill] sm:$0xff] %v3072_v4 }
 0x23c   :  { %v3074_v32 = vpop.xlane.xlu0 %1148 }
 0x23d   :  { %3977 = vst [vmem:[#allocation63_spill] sm:$0xff] %v3074_v32 }
 0x23e   :  { %v3076_v9 = vpop.xlane.xlu1 %1150 }
 0x23f   :  { %3978 = vst [vmem:[#allocation64_spill] sm:$0xff] %v3076_v9  ;;  %v3116_v9 = vadd.f32 %v2736_v60, %v2675_v10  ;;  %v3136_v60 = vadd.f32 %v2772_v26, %v2675_v10  ;;  %v3157_v26 = vadd.f32 %v2807_v13, %v2675_v10  ;;  %v3175_v13 = vadd.f32 %v2831_v54, %v2675_v10 }
 0x240   :  { %v3078_v1 = vpop.xlane.xlu0 %1048  ;;  %v3197_v54 = vadd.f32 %v2891_v38, %v2675_v10  ;;  %v3215_v38 = vadd.f32 %v2916_v62, %v2675_v10  ;;  %v4005_v62 = vld [vmem:[#allocation33_spill] sm:$0xff] }
 0x241   :  { %3979 = vst [vmem:[#allocation65_spill] sm:$0xff] %v3078_v1  ;;  %3990 = vst [vmem:[#allocation76_spill] sm:$0xff] %v3136_v60 }
 0x242   :  { %v3080_v34 = vpop.xlane.xlu1 %1050  ;;  %3993 = vst [vmem:[#allocation79_spill] sm:$0xff] %v3157_v26  ;;  %3997 = vst [vmem:[#allocation83_spill] sm:$0xff] %v3175_v13 }
 0x243   :  { %3980 = vst [vmem:[#allocation66_spill] sm:$0xff] %v3080_v34  ;;  %v3104_v34 = vadd.f32 %v2689_v27, %v2675_v10  ;;  %v3124_v27 = vadd.f32 %v2762_v17, %v2675_v10  ;;  %v3144_v17 = vadd.f32 %v2790_v35, %v2675_v10  ;;  %4002 = vst [vmem:[#allocation88_spill] sm:$0xff] %v3197_v54 }
 0x244   :  { %v3082_v11 = vpop.xlane.xlu0 %1152  ;;  %4003 = vst [vmem:[#allocation89_spill] sm:$0xff] %v3215_v38  ;;  %v3234_v54 = vadd.f32 %v4005_v62, %v2675_v10 }
 0x245   :  { %3981 = vst [vmem:[#allocation67_spill] sm:$0xff] %v3082_v11  ;;  %3987 = vst [vmem:[#allocation73_spill] sm:$0xff] %v3104_v34  ;;  %v3112_v11 = vadd.f32 %v2728_v52, %v2675_v10  ;;  %v3132_v52 = vadd.f32 %v2769_v24, %v2675_v10  ;;  %v3153_v24 = vadd.f32 %v2796_v61, %v2675_v10 }
 0x246   :  { %v3084_v20 = vpop.xlane.xlu1 %1154  ;;  %3991 = vst [vmem:[#allocation77_spill] sm:$0xff] %v3144_v17  ;;  %v3165_v17 = vadd.f32 %v2817_v31, %v2675_v10  ;;  %v3183_v31 = vadd.f32 %v2855_v23, %v2675_v10  ;;  %v3203_v23 = vadd.f32 %v2894_v37, %v2675_v10  ;;  %v3225_v37 = vadd.f32 %v2926_v12, %v2675_v10 }
 0x247   :  { %3982 = vst [vmem:[#allocation68_spill] sm:$0xff] %v3084_v20  ;;  %v3108_v20 = vadd.f32 %v2718_v46, %v2675_v10  ;;  %v3128_v46 = vadd.f32 %v2765_v19, %v2675_v10  ;;  %3992 = vst [vmem:[#allocation78_spill] sm:$0xff] %v3153_v24 }
 0x248   :  { %v3086_v45 = vpop.xlane.xlu0 %1052  ;;  %3995 = vst [vmem:[#allocation81_spill] sm:$0xff] %v3165_v17  ;;  %3999 = vst [vmem:[#allocation85_spill] sm:$0xff] %v3183_v31 }
 0x249   :  { %3983 = vst [vmem:[#allocation69_spill] sm:$0xff] %v3086_v45  ;;  %3989 = vst [vmem:[#allocation75_spill] sm:$0xff] %v3128_v46  ;;  %v3149_v46 = vadd.f32 %v2793_v59, %v2675_v10  ;;  %v3169_v59 = vadd.f32 %v2820_v25, %v2675_v10  ;;  %v3187_v25 = vadd.f32 %v2858_v33, %v2675_v10 }
 0x24a   :  { %v3088_v6 = vpop.xlane.xlu1 %1054  ;;  %v3207_v33 = vadd.f32 %v2900_v51, %v2675_v10  ;;  %4004 = vst [vmem:[#allocation90_spill] sm:$0xff] %v3225_v37  ;;  %4006 = vst [vmem:[#allocation33_spill] sm:$0xff] %v3234_v54  ;;  %v4026_v37 = vld [vmem:[#allocation51_spill] sm:$0xff] }
 0x24b   :  { %3984 = vst [vmem:[#allocation70_spill] sm:$0xff] %v3088_v6  ;;  %3996 = vst [vmem:[#allocation82_spill] sm:$0xff] %v3169_v59 }
 0x24c   :  { %v3090_v50 = vpop.xlane.xlu0 %1172  ;;  %4000 = vst [vmem:[#allocation86_spill] sm:$0xff] %v3187_v25 }
 0x24e   :  { %v3092_v44 = vpop.xlane.xlu1 %1174 }
 0x250   :  { %v3094_v4 = vpop.xlane.xlu0 %1056 }
 0x251   :  { %3985 = vst [vmem:[#allocation71_spill] sm:$0xff] %v3094_v4 }
 0x252   :  { %v3096_v56 = vpop.xlane.xlu1 %1058 }
 0x253   :  { %3986 = vst [vmem:[#allocation72_spill] sm:$0xff] %v3096_v56  ;;  %v3120_v56 = vadd.f32 %v2744_v5, %v2675_v10  ;;  %v3140_v5 = vadd.f32 %v2787_v53, %v2675_v10  ;;  %v3161_v53 = vadd.f32 %v2810_v16, %v2675_v10  ;;  %v3179_v16 = vadd.f32 %v2841_v43, %v2675_v10 }
 0x254   :  { %v3098_v7 = vpop.xlane.xlu0 %1176 }
 0x255   :  { %3988 = vst [vmem:[#allocation74_spill] sm:$0xff] %v3120_v56  ;;  %3994 = vst [vmem:[#allocation80_spill] sm:$0xff] %v3161_v53 }
 0x256   :  { %v3100_v1 = vpop.xlane.xlu1 %1178  ;;  %3998 = vst [vmem:[#allocation84_spill] sm:$0xff] %v3179_v16  ;;  %v4009_v16 = vld [vmem:[#allocation35_spill] sm:$0xff] }
 0x257   :  { %v3254_v13 = vadd.f32 %v4009_v16, %v2675_v10  ;;  %v3276_v16 = vadd.f32 %v2971_v29, %v2675_v10  ;;  %v3292_v29 = vadd.f32 %v2987_v28, %v2675_v10 }
 0x258   :  { %v1077_v34 = vpop.xlane.xlu0 %1076 }
 0x259   :  { %v1220_v19 = vadd.f32 %v1077_v34, %v3038_v57  ;;  %4010 = vst [vmem:[#allocation35_spill] sm:$0xff] %v3254_v13  ;;  %4017 = vst [vmem:[#allocation93_spill] sm:$0xff] %v3276_v16 }
 0x25a   :  { %v1079_v35 = vpop.xlane.xlu1 %1078  ;;  %4019 = vst [vmem:[#allocation95_spill] sm:$0xff] %v3292_v29  ;;  %v3309_v29 = vadd.f32 %v2993_v2, %v2675_v10 }
 0x25b   :  { %v1236_v61 = vadd.f32 %v1220_v19, %v3022_v36  ;;  %v1221_v24 = vadd.f32 %v1079_v35, %v3046_v42  ;;  %v3193_v19 = vadd.f32 %v2865_v41, %v2675_v10  ;;  %v3211_v41 = vadd.f32 %v2910_v22, %v2675_v10 }
 0x25c   :  { %v3189_v59 = vpop.xlane.xlu0 %1180  ;;  %v3230_v22 = vadd.f32 %v2929_v63, %v2675_v10  ;;  %4022 = vst [vmem:[#allocation96_spill] sm:$0xff] %v3309_v29 }
 0x25d   :  { %4001 = vst [vmem:[#allocation87_spill] sm:$0xff] %v3193_v19  ;;  %v1252_v43 = vadd.f32 %v1236_v61, %v3090_v50  ;;  %v1237_v53 = vadd.f32 %v1221_v24, %v3024_v15  ;;  %v3221_v24 = vadd.f32 %v2923_v8, %v2675_v10  ;;  %v3238_v19 = vadd.f32 %v2939_v30, %v2675_v10  ;;  %v4007_v8 = vld [vmem:[#allocation34_spill] sm:$0xff] }
 0x25e   :  { %v3217_v25 = vpop.xlane.xlu1 %1182  ;;  %v3242_v31 = vadd.f32 %v4007_v8, %v2675_v10  ;;  %v3258_v30 = vadd.f32 %v2955_v49, %v2675_v10  ;;  %v4012_v8 = vld [vmem:[#allocation36_spill] sm:$0xff] }
 0x25f   :  { %v1268_v51 = vmul.f32 0.25, %v1252_v43  ;;  %v1253_v61 = vadd.f32 %v1237_v53, %v3092_v44  ;;  %v3248_v53 = vadd.f32 %v2945_v58, %v2675_v10  ;;  %v3266_v58 = vadd.f32 %v2961_v48, %v2675_v10 }
 0x260   :  { %4008 = vst [vmem:[#allocation34_spill] sm:$0xff] %v3242_v31  ;;  %v3244_v12 = vpop.xlane.xlu0 %1080  ;;  %4011 = vst [vmem:[#allocation91_spill] sm:$0xff] %v3258_v30  ;;  %v3262_v31 = vadd.f32 %v4012_v8, %v2675_v10  ;;  %v1232_v8 = vadd.f32 %v3034_v0, %v3086_v45 }
 0x261   :  { %v1284_v63 = vmul.f32 2.0, %v1268_v51  ;;  %v1269_v43 = vmul.f32 0.25, %v1253_v61  ;;  %v1222_v62 = vadd.f32 %v3244_v12, %v3044_v47  ;;  %4014 = vst [vmem:[#allocation92_spill] sm:$0xff] %v3266_v58  ;;  %v4015_v61 = vld [vmem:[#allocation37_spill] sm:$0xff] }
 0x262   :  { %4013 = vst [vmem:[#allocation36_spill] sm:$0xff] %v3262_v31  ;;  %v3268_v51 = vpop.xlane.xlu1 %1082  ;;  %v3272_v54 = vadd.f32 %v4015_v61, %v2675_v10  ;;  %v3288_v61 = vadd.f32 %v2977_v21, %v2675_v10 }
 0x263   :  { %v1300_v49 = vsub.f32 %v1284_v63, %v3038_v57  ;;  %v1316_v13 = vsub.f32 %v1284_v63, %v1077_v34  ;;  %v1285_v31 = vmul.f32 2.0, %v1269_v43  ;;  %v1238_v48 = vadd.f32 %v1222_v62, %v3030_v18  ;;  %v4020_v43 = vld [vmem:[#allocation40_spill] sm:$0xff] }
 0x264   :  { %4016 = vst [vmem:[#allocation37_spill] sm:$0xff] %v3272_v54  ;;  %v1223_v60 = vadd.f32 %v3268_v51, %v3048_v3  ;;  %v3284_v58 = vpop.xlane.xlu0 %1184  ;;  %4018 = vst [vmem:[#allocation94_spill] sm:$0xff] %v3288_v61  ;;  %v1332_v57 = vsub.f32 %v1284_v63, %v3022_v36  ;;  %v3297_v54 = vadd.f32 %v4020_v43, %v2675_v10 }
 0x265   :  { %v1364_v34 = vmax.f32 %v1300_v49, %v1316_v13  ;;  %v1233_v62 = vadd.f32 %v3036_v14, %v3088_v6  ;;  %v1301_v16 = vsub.f32 %v1285_v31, %v3046_v42  ;;  %v1317_v0 = vsub.f32 %v1285_v31, %v1079_v35 }
 0x266   :  { %4021 = vst [vmem:[#allocation40_spill] sm:$0xff] %v3297_v54  ;;  %v3302_v17 = vpop.xlane.xlu1 %1186  ;;  %v1348_v21 = vsub.f32 %v1284_v63, %v3090_v50  ;;  %v1254_v28 = vadd.f32 %v1238_v48, %v3098_v7  ;;  %v1239_v36 = vadd.f32 %v1223_v60, %v3032_v40  ;;  %v1333_v43 = vsub.f32 %v1285_v31, %v3024_v15 }
 0x267   :  { %v1380_v61 = vmax.f32 %v1364_v34, %v1332_v57  ;;  %v1365_v54 = vmax.f32 %v1301_v16, %v1317_v0  ;;  %v3315_v42 = vadd.f32 %v1232_v8, %v3074_v32  ;;  %v3322_v60 = vadd.f32 %v3026_v39, %v3094_v4  ;;  %v4024_v34 = vld [vmem:[#allocation64_spill] sm:$0xff] }
 0x268   :  { %v3312_v14 = vpop.xlane.xlu0 %1084  ;;  %v1270_v6 = vmul.f32 0.25, %v1254_v28  ;;  %v1255_v50 = vadd.f32 %v1239_v36, %v3100_v1  ;;  %v1349_v2 = vsub.f32 %v1285_v31, %v3092_v44  ;;  %v3328_v10 = vadd.f32 %v1233_v62, %v4024_v34  ;;  %v4027_v31 = vld [vmem:[#allocation54_spill] sm:$0xff] }
 0x269   :  { %v1396_v35 = vmax.f32 %v1380_v61, %v1348_v21  ;;  %v1224_v63 = vadd.f32 %v3312_v14, %v3054_v55  ;;  %4023 = vst [vmem:[#allocation97_spill] sm:$0xff] %v3322_v60  ;;  %v1381_v15 = vmax.f32 %v1365_v54, %v1333_v43 }
 0x26a   :  { %v3325_v48 = vpop.xlane.xlu1 %1086  ;;  %4025 = vst [vmem:[#allocation98_spill] sm:$0xff] %v3328_v10  ;;  %v1286_v32 = vmul.f32 2.0, %v1270_v6  ;;  %v1271_v45 = vmul.f32 0.25, %v1255_v50 }
 0x26b   :  { %v1412_v8 = vsub.f32 %v1300_v49, %v1396_v35  ;;  %v1460_v61 = vsub.f32 %v1316_v13, %v1396_v35  ;;  %v1508_v28 = vsub.f32 %v1332_v57, %v1396_v35  ;;  %v1556_v29 = vsub.f32 %v1348_v21, %v1396_v35 }
 0x26c   :  { %v1397_v36 = vmax.f32 %v1381_v15, %v1349_v2  ;;  %v1240_v30 = vadd.f32 %v1224_v63, %v4026_v37  ;;  %v3331_v26 = vpop.xlane.xlu0 %1188  ;;  %v1225_v54 = vadd.f32 %v3325_v48, %v4027_v31  ;;  %v1302_v6 = vsub.f32 %v1286_v32, %v3044_v47 }
 0x26d   :  { %v1428_v39 = vmul.f32 1.442695, %v1412_v8  ;;  %v1476_v4 = vmul.f32 1.442695, %v1460_v61  ;;  %v1524_v44 = vmul.f32 1.442695, %v1508_v28  ;;  %v1318_v21 = vsub.f32 %v1286_v32, %v3244_v12 }
 0x26e   :  { %v1572_v60 = vmul.f32 1.442695, %v1556_v29  ;;  %v1413_v62 = vsub.f32 %v1301_v16, %v1397_v36  ;;  %v1461_v34 = vsub.f32 %v1317_v0, %v1397_v36  ;;  %v1509_v49 = vsub.f32 %v1333_v43, %v1397_v36  ;;  %v3335_v13 = vpop.xlane.xlu1 %1190  ;;  %v4030_v61 = vld [vmem:[#allocation58_spill] sm:$0xff] }
 0x26f   :  { %2125 = vpow2.f32 %v1428_v39  ;;  %v1557_v57 = vsub.f32 %v1349_v2, %v1397_v36  ;;  %v1334_v16 = vsub.f32 %v1286_v32, %v3030_v18  ;;  %v1350_v0 = vsub.f32 %v1286_v32, %v3098_v7  ;;  %v4029_v2 = vld [vmem:[#allocation57_spill] sm:$0xff] }
 0x270   :  { %2127 = vpow2.f32 %v1476_v4  ;;  %v1430_v35 = vmul.f32 1.442695, %v1413_v62  ;;  %v1478_v50 = vmul.f32 1.442695, %v1461_v34  ;;  %v1526_v63 = vmul.f32 1.442695, %v1509_v49  ;;  %v3339_v15 = vpop.xlane.xlu0 %1088 }
 0x271   :  { %2129 = vpow2.f32 %v1524_v44  ;;  %v1574_v8 = vmul.f32 1.442695, %v1557_v57  ;;  %v1366_v29 = vmax.f32 %v1302_v6, %v1318_v21  ;;  %v1287_v39 = vmul.f32 2.0, %v1271_v45  ;;  %v4028_v4 = vld [vmem:[#allocation50_spill] sm:$0xff]  ;;  %v4031_v45 = vld [vmem:[#allocation72_spill] sm:$0xff] }
 0x272   :  { %2131 = vpow2.f32 %v1572_v60  ;;  %v1256_v43 = vadd.f32 %v1240_v30, %v3189_v59  ;;  %v3344_v47 = vpop.xlane.xlu1 %1090  ;;  %v1241_v12 = vadd.f32 %v1225_v54, %v4028_v4  ;;  %v1226_v34 = vadd.f32 %v3339_v15, %v4029_v2  ;;  %v4032_v60 = vld [vmem:[#allocation47_spill] sm:$0xff] }
 0x273   :  { %2133 = vpow2.f32 %v1430_v35  ;;  %v1227_v28 = vadd.f32 %v3344_v47, %v4030_v61  ;;  %v1382_v18 = vmax.f32 %v1366_v29, %v1334_v16  ;;  %v1303_v7 = vsub.f32 %v1287_v39, %v3048_v3  ;;  %v4035_v29 = vld [vmem:[#allocation53_spill] sm:$0xff] }
 0x274   :  { %2135 = vpow2.f32 %v1478_v50  ;;  %v1319_v32 = vsub.f32 %v1287_v39, %v3268_v51  ;;  %v3355_v30 = vadd.f32 %v4032_v60, %v4031_v45  ;;  %v1335_v36 = vsub.f32 %v1287_v39, %v3032_v40  ;;  %v4034_v50 = vld [vmem:[#allocation52_spill] sm:$0xff] }
 0x275   :  { %2137 = vpow2.f32 %v1526_v63  ;;  %v1272_v44 = vmul.f32 0.25, %v1256_v43  ;;  %v1398_v54 = vmax.f32 %v1382_v18, %v1350_v0  ;;  %v1351_v62 = vsub.f32 %v1287_v39, %v3100_v1 }
 0x276   :  { %4033 = vst [vmem:[#allocation51_spill] sm:$0xff] %v3355_v30  ;;  %2139 = vpow2.f32 %v1574_v8  ;;  %v1367_v49 = vmax.f32 %v1303_v7, %v1319_v32  ;;  %v1257_v35 = vadd.f32 %v1241_v12, %v3217_v25  ;;  %v1242_v3 = vadd.f32 %v1226_v34, %v4034_v50 }
 0x277   :  { %v1288_v57 = vmul.f32 2.0, %v1272_v44  ;;  %v1243_v51 = vadd.f32 %v1227_v28, %v4035_v29  ;;  %v1414_v10 = vsub.f32 %v1302_v6, %v1398_v54  ;;  %v1462_v38 = vsub.f32 %v1318_v21, %v1398_v54 }
 0x278   :  { %v1510_v60 = vsub.f32 %v1334_v16, %v1398_v54  ;;  %v1558_v45 = vsub.f32 %v1350_v0, %v1398_v54  ;;  %v1383_v40 = vmax.f32 %v1367_v49, %v1335_v36 }
 0x279   :  { %v3362_v63 = vpop.eup %2125  ;;  %v1304_v8 = vsub.f32 %v1288_v57, %v3054_v55  ;;  %v1320_v43 = vsub.f32 %v1288_v57, %v3312_v14  ;;  %v1336_v1 = vsub.f32 %v1288_v57, %v4026_v37  ;;  %v1432_v12 = vmul.f32 1.442695, %v1414_v10 }
 0x27a   :  { %v3367_v39 = vpop.eup %2127  ;;  %v1480_v18 = vmul.f32 1.442695, %v1462_v38  ;;  %v1528_v34 = vmul.f32 1.442695, %v1510_v60  ;;  %v1352_v28 = vsub.f32 %v1288_v57, %v3189_v59  ;;  %v1576_v16 = vmul.f32 1.442695, %v1558_v45  ;;  %v3378_v38 = vpop.xlane.xlu0 %1192 }
 0x27b   :  { %v3370_v6 = vpop.eup %2129  ;;  %v1620_v21 = vadd.f32 %v3367_v39, %v3362_v63  ;;  %v1399_v0 = vmax.f32 %v1383_v40, %v1351_v62  ;;  %v1368_v44 = vmax.f32 %v1304_v8, %v1320_v43  ;;  %2141 = vpow2.f32 %v1432_v12  ;;  %4036 = vst [vmem:[#allocation54_spill] sm:$0xff] %v3378_v38 }
 0x27c   :  { %v3374_v55 = vpop.eup %2131  ;;  %v1273_v14 = vmul.f32 0.25, %v1257_v35  ;;  %v1258_v37 = vadd.f32 %v1242_v3, %v3284_v58  ;;  %v1259_v10 = vadd.f32 %v1243_v51, %v3302_v17  ;;  %2143 = vpow2.f32 %v1480_v18  ;;  %v3385_v35 = vpop.xlane.xlu1 %1194 }
 0x27d   :  { %v3380_v60 = vpop.eup %2133  ;;  %v1636_v59 = vadd.f32 %v3370_v6, %v1620_v21  ;;  %v1415_v54 = vsub.f32 %v1303_v7, %v1399_v0  ;;  %v1463_v49 = vsub.f32 %v1319_v32, %v1399_v0  ;;  %2145 = vpow2.f32 %v1528_v34  ;;  %4037 = vst [vmem:[#allocation50_spill] sm:$0xff] %v3385_v35 }
 0x27e   :  { %v3383_v45 = vpop.eup %2135  ;;  %v1511_v57 = vsub.f32 %v1335_v36, %v1399_v0  ;;  %v1559_v40 = vsub.f32 %v1351_v62, %v1399_v0  ;;  %v1384_v12 = vmax.f32 %v1368_v44, %v1336_v1  ;;  %2147 = vpow2.f32 %v1576_v16  ;;  %v3395_v56 = vpop.xlane.xlu0 %1092 }
 0x27f   :  { %v3387_v3 = vpop.eup %2137  ;;  %v1652_v51 = vadd.f32 %v3374_v55, %v1636_v59  ;;  %v1621_v30 = vadd.f32 %v3383_v45, %v3380_v60  ;;  %v1434_v21 = vmul.f32 1.442695, %v1415_v54  ;;  %v1482_v7 = vmul.f32 1.442695, %v1463_v49 }
 0x280   :  { %v3392_v18 = vpop.eup %2139  ;;  %v1530_v32 = vmul.f32 1.442695, %v1511_v57  ;;  %v1578_v38 = vmul.f32 1.442695, %v1559_v40  ;;  %v1400_v34 = vmax.f32 %v1384_v12, %v1352_v28  ;;  %v1289_v62 = vmul.f32 2.0, %v1273_v14 }
 0x281   :  { %2149 = vrcp.f32 %v1652_v51  ;;  %v1637_v36 = vadd.f32 %v3387_v3, %v1621_v30  ;;  %v1274_v0 = vmul.f32 0.25, %v1258_v37  ;;  %v3399_v51 = vpop.xlane.xlu1 %1094 }
 0x282   :  { %2151 = vpow2.f32 %v1434_v21  ;;  %v1416_v44 = vsub.f32 %v1304_v8, %v1400_v34  ;;  %v1464_v35 = vsub.f32 %v1320_v43, %v1400_v34  ;;  %v1512_v59 = vsub.f32 %v1336_v1, %v1400_v34  ;;  %4038 = vst [vmem:[#allocation57_spill] sm:$0xff] %v3399_v51  ;;  %v4039_v21 = vld [vmem:[#allocation61_spill] sm:$0xff] }
 0x283   :  { %v1653_v16 = vadd.f32 %v3392_v18, %v1637_v36  ;;  %2153 = vpow2.f32 %v1482_v7  ;;  %v1560_v54 = vsub.f32 %v1352_v28, %v1400_v34  ;;  %v1305_v49 = vsub.f32 %v1289_v62, %v4027_v31 }
 0x284   :  { %2155 = vpow2.f32 %v1530_v32  ;;  %v1436_v57 = vmul.f32 1.442695, %v1416_v44  ;;  %v1484_v40 = vmul.f32 1.442695, %v1464_v35  ;;  %v1532_v12 = vmul.f32 1.442695, %v1512_v59 }
 0x285   :  { %2157 = vrcp.f32 %v1653_v16  ;;  %v1580_v30 = vmul.f32 1.442695, %v1560_v54  ;;  %v1321_v8 = vsub.f32 %v1289_v62, %v3325_v48  ;;  %v1337_v43 = vsub.f32 %v1289_v62, %v4028_v4  ;;  %v3403_v1 = vpop.eup %2141  ;;  %v4040_v32 = vld [vmem:[#allocation62_spill] sm:$0xff] }
 0x286   :  { %2159 = vpow2.f32 %v1578_v38  ;;  %v3406_v14 = vsub.f32 %v1289_v62, %v3217_v25  ;;  %v1290_v28 = vmul.f32 2.0, %v1274_v0  ;;  %v1275_v31 = vmul.f32 0.25, %v1259_v10  ;;  %v3408_v37 = vpop.eup %2143  ;;  %v3424_v38 = vpop.xlane.xlu0 %1196 }
 0x287   :  { %2161 = vpow2.f32 %v1436_v57  ;;  %v1369_v35 = vmax.f32 %v1305_v49, %v1321_v8  ;;  %v1228_v7 = vadd.f32 %v3395_v56, %v4039_v21  ;;  %v1229_v48 = vadd.f32 %v3399_v51, %v4040_v32  ;;  %v3414_v34 = vpop.eup %2145  ;;  %4041 = vst [vmem:[#allocation58_spill] sm:$0xff] %v3424_v38  ;;  %v4042_v57 = vld [vmem:[#allocation55_spill] sm:$0xff] }
 0x288   :  { %v1622_v4 = vadd.f32 %v3408_v37, %v3403_v1  ;;  %2163 = vpow2.f32 %v1484_v40  ;;  %v3419_v25 = vsub.f32 %v1290_v28, %v4029_v2  ;;  %v3422_v10 = vsub.f32 %v1290_v28, %v3339_v15  ;;  %v3426_v36 = vpop.eup %2147 }
 0x289   :  { %2165 = vpow2.f32 %v1532_v12  ;;  %v1385_v62 = vmax.f32 %v1369_v35, %v1337_v43  ;;  %v3429_v0 = vsub.f32 %v1290_v28, %v4034_v50  ;;  %v3432_v44 = vsub.f32 %v1290_v28, %v3284_v58  ;;  %v4043_v12 = vld [vmem:[#allocation56_spill] sm:$0xff] }
 0x28a   :  { %v1638_v59 = vadd.f32 %v3414_v34, %v1622_v4  ;;  %2167 = vpow2.f32 %v1580_v30  ;;  %v1370_v2 = vmax.f32 %v3419_v25, %v3422_v10  ;;  %v3437_v15 = vmul.f32 2.0, %v1275_v31 }
 0x28b   :  { %v2150_v16 = vpop.eup %2149  ;;  %v1401_v54 = vmax.f32 %v1385_v62, %v3406_v14  ;;  %v3441_v40 = vadd.f32 %v1228_v7, %v4042_v57  ;;  %v3444_v50 = vadd.f32 %v1229_v48, %v4043_v12  ;;  %v3448_v58 = vadd.f32 %v3315_v42, %v3424_v38 }
 0x28c   :  { %v3450_v28 = vpop.eup %2151  ;;  %v1684_v30 = vmul.f32 %v2150_v16, %v3362_v63  ;;  %v1716_v31 = vmul.f32 %v2150_v16, %v3367_v39  ;;  %v1764_v35 = vmul.f32 %v2150_v16, %v3370_v6  ;;  %v1812_v4 = vmul.f32 %v2150_v16, %v3374_v55 }
 0x28d   :  { %v3456_v62 = vpop.eup %2153  ;;  %v1654_v7 = vadd.f32 %v3426_v36, %v1638_v59  ;;  %v1417_v48 = vsub.f32 %v1305_v49, %v1401_v54  ;;  %v1465_v12 = vsub.f32 %v1321_v8, %v1401_v54  ;;  %v1513_v51 = vsub.f32 %v1337_v43, %v1401_v54 }
 0x28e   :  { %v3459_v32 = vpop.eup %2155  ;;  %v1700_v42 = vmul.f32 %v1684_v30, %v3124_v27  ;;  %v1732_v38 = vmul.f32 %v1716_v31, %v3221_v24  ;;  %v1780_v63 = vmul.f32 %v1764_v35, %v3108_v20  ;;  %v1828_v39 = vmul.f32 %v1812_v4, %v3203_v23 }
 0x28f   :  { %v2158_v6 = vpop.eup %2157  ;;  %2169 = vrcp.f32 %v1654_v7  ;;  %v1623_v55 = vadd.f32 %v3456_v62, %v3450_v28  ;;  %v1438_v16 = vmul.f32 1.442695, %v1417_v48  ;;  %v1486_v59 = vmul.f32 1.442695, %v1465_v12 }
 0x290   :  { %v3467_v49 = vpop.eup %2159  ;;  %v1748_v8 = vadd.f32 %v1732_v38, %v1700_v42  ;;  %v1685_v43 = vmul.f32 %v2158_v6, %v3380_v60  ;;  %v1717_v27 = vmul.f32 %v2158_v6, %v3383_v45  ;;  %v1765_v24 = vmul.f32 %v2158_v6, %v3387_v3 }
 0x291   :  { %v3472_v30 = vpop.eup %2161  ;;  %v1813_v20 = vmul.f32 %v2158_v6, %v3392_v18  ;;  %v1639_v23 = vadd.f32 %v3459_v32, %v1623_v55  ;;  %2171 = vpow2.f32 %v1438_v16  ;;  %v1534_v31 = vmul.f32 1.442695, %v1513_v51 }
 0x292   :  { %v3476_v35 = vpop.eup %2163  ;;  %v1796_v12 = vadd.f32 %v1780_v63, %v1748_v8  ;;  %v1701_v4 = vmul.f32 %v1685_v43, %v3132_v52  ;;  %v1733_v38 = vmul.f32 %v1717_v27, %v3230_v22  ;;  %v1781_v60 = vmul.f32 %v1765_v24, %v3112_v11  ;;  %v2285_v63 = vld [vmem:[#allocation2] sm:$0xff] }
 0x293   :  { %v3481_v45 = vpop.eup %2165  ;;  %v1829_v3 = vmul.f32 %v1813_v20, %v3207_v33  ;;  %v1655_v7 = vadd.f32 %v3467_v49, %v1639_v23  ;;  %v1624_v18 = vadd.f32 %v3476_v35, %v3472_v30  ;;  %2173 = vpow2.f32 %v1486_v59 }
 0x294   :  { %v3487_v51 = vpop.eup %2167  ;;  %v1844_v48 = vadd.f32 %v1828_v39, %v1796_v12  ;;  %v1749_v42 = vadd.f32 %v1733_v38, %v1701_v4  ;;  %2175 = vpow2.f32 %v1534_v31  ;;  %v1561_v52 = vsub.f32 %v3406_v14, %v1401_v54 }
 0x295   :  { %2177 = vrcp.f32 %v1655_v7  ;;  %v1640_v11 = vadd.f32 %v3481_v45, %v1624_v18  ;;  %v1386_v22 = vmax.f32 %v1370_v2, %v3429_v0  ;;  %v3494_v33 = vsub.f32 %v3437_v15, %v4030_v61 }
 0x296   :  { %v1860_v6 = vadd.f32 %v2285_v63, %v1844_v48  ;;  %v1797_v55 = vadd.f32 %v1781_v60, %v1749_v42  ;;  %v1582_v16 = vmul.f32 1.442695, %v1561_v52  ;;  %v3498_v39 = vsub.f32 %v3437_v15, %v3344_v47 }
 0x297   :  { %v1656_v59 = vadd.f32 %v3487_v51, %v1640_v11  ;;  %v1402_v14 = vmax.f32 %v1386_v22, %v3432_v44  ;;  %v3504_v54 = vsub.f32 %v3437_v15, %v4035_v29  ;;  %v3508_v61 = vsub.f32 %v3437_v15, %v3302_v17  ;;  %v2286_v29 = vld [vmem:[#allocation2 + $0x8] sm:$0xff] }
 0x298   :  { %v1876_v2 = vmul.f32 0.5, %v1860_v6  ;;  %v1845_v8 = vadd.f32 %v1829_v3, %v1797_v55  ;;  %2179 = vpow2.f32 %v1582_v16  ;;  %v1371_v43 = vmax.f32 %v3494_v33, %v3498_v39 }
 0x299   :  { %v2170_v47 = vpop.eup %2169  ;;  %2181 = vrcp.f32 %v1656_v59  ;;  %v1418_v27 = vsub.f32 %v3419_v25, %v1402_v14  ;;  %v1466_v24 = vsub.f32 %v3422_v10, %v1402_v14  ;;  %v1514_v20 = vsub.f32 %v3429_v0, %v1402_v14 }
 0x29a   :  { %1892 = vst [vmem:[#allocation13] sm:$0xff] %v1876_v2  ;;  %v1861_v23 = vadd.f32 %v2286_v29, %v1845_v8  ;;  %v1686_v17 = vmul.f32 %v2170_v47, %v3403_v1  ;;  %v1718_v15 = vmul.f32 %v2170_v47, %v3408_v37  ;;  %v1766_v31 = vmul.f32 %v2170_v47, %v3414_v34  ;;  %v4044_v2 = vld [vmem:[#allocation74_spill] sm:$0xff] }
 0x29b   :  { %v3518_v12 = vpop.eup %2171  ;;  %v1814_v4 = vmul.f32 %v2170_v47, %v3426_v36  ;;  %v1440_v38 = vmul.f32 1.442695, %v1418_v27  ;;  %v1488_v60 = vmul.f32 1.442695, %v1466_v24  ;;  %v1536_v25 = vmul.f32 1.442695, %v1514_v20 }
 0x29c   :  { %v1877_v3 = vmul.f32 0.5, %v1861_v23  ;;  %v1702_v10 = vmul.f32 %v1686_v17, %v3140_v5  ;;  %v1734_v0 = vmul.f32 %v1718_v15, %v3238_v19  ;;  %v1782_v7 = vmul.f32 %v1766_v31, %v3116_v9  ;;  %v2287_v27 = vld [vmem:[#allocation2 + $0x10] sm:$0xff]  ;;  %v4046_v31 = vld [vmem:[#allocation79_spill] sm:$0xff] }
 0x29d   :  { %v3524_v18 = vpop.eup %2173  ;;  %v1830_v1 = vmul.f32 %v1814_v4, %v3211_v41  ;;  %2183 = vpow2.f32 %v1440_v38  ;;  %v1562_v37 = vsub.f32 %v3432_v44, %v1402_v14  ;;  %v1387_v34 = vmax.f32 %v1371_v43, %v3504_v54  ;;  %v4047_v38 = vld [vmem:[#allocation91_spill] sm:$0xff] }
 0x29e   :  { %v3529_v36 = vpop.eup %2175  ;;  %1893 = vst [vmem:[#allocation13 + $0x8] sm:$0xff] %v1877_v3  ;;  %v1750_v48 = vadd.f32 %v1734_v0, %v1702_v10  ;;  %v1625_v5 = vadd.f32 %v3524_v18, %v3518_v12  ;;  %2185 = vpow2.f32 %v1488_v60  ;;  %v1260_v9 = vadd.f32 %v3441_v40, %v3331_v26  ;;  %v4049_v10 = vld [vmem:[#allocation90_spill] sm:$0xff] }
 0x29f   :  { %v2178_v19 = vpop.eup %2177  ;;  %2187 = vpow2.f32 %v1536_v25  ;;  %v1584_v42 = vmul.f32 1.442695, %v1562_v37  ;;  %v1403_v41 = vmax.f32 %v1387_v34, %v3508_v61  ;;  %v1261_v44 = vadd.f32 %v3444_v50, %v3335_v13  ;;  %v4048_v25 = vld [vmem:[#allocation75_spill] sm:$0xff] }
 0x2a0   :  { %v1798_v52 = vadd.f32 %v1782_v7, %v1750_v48  ;;  %v1687_v11 = vmul.f32 %v2178_v19, %v3450_v28  ;;  %v1719_v22 = vmul.f32 %v2178_v19, %v3456_v62  ;;  %v1767_v63 = vmul.f32 %v2178_v19, %v3459_v32  ;;  %v4045_v62 = vld [vmem:[#allocation89_spill] sm:$0xff] }
 0x2a1   :  { %v1815_v6 = vmul.f32 %v2178_v19, %v3467_v49  ;;  %v1641_v55 = vadd.f32 %v3529_v36, %v1625_v5  ;;  %2189 = vpow2.f32 %v1584_v42  ;;  %v1419_v40 = vsub.f32 %v3494_v33, %v1403_v41  ;;  %v2288_v19 = vld [vmem:[#allocation2 + $0x18] sm:$0xff] }
 0x2a2   :  { %v3544_v16 = vpop.eup %2179  ;;  %v1846_v59 = vadd.f32 %v1830_v1, %v1798_v52  ;;  %v1703_v14 = vmul.f32 %v1687_v11, %v3149_v46  ;;  %v1735_v50 = vmul.f32 %v1719_v22, %v3248_v53  ;;  %v1783_v28 = vmul.f32 %v1767_v63, %v4044_v2  ;;  %v2289_v2 = vld [vmem:[#allocation2 + $0x20] sm:$0xff] }
 0x2a3   :  { %v2182_v8 = vpop.eup %2181  ;;  %v1831_v43 = vmul.f32 %v1815_v6, %v4045_v62  ;;  %v1657_v32 = vadd.f32 %v3544_v16, %v1641_v55  ;;  %v1442_v49 = vmul.f32 1.442695, %v1419_v40  ;;  %v1467_v47 = vsub.f32 %v3498_v39, %v1403_v41  ;;  %v4050_v40 = vld [vmem:[#allocation67_spill] sm:$0xff]  ;;  %v4052_v62 = vld [vmem:[#allocation62_spill] sm:$0xff] }
 0x2a4   :  { %v1862_v24 = vadd.f32 %v2287_v27, %v1846_v59  ;;  %v1751_v33 = vadd.f32 %v1735_v50, %v1703_v14  ;;  %v1688_v20 = vmul.f32 %v2182_v8, %v3472_v30  ;;  %v1720_v29 = vmul.f32 %v2182_v8, %v3476_v35  ;;  %v4051_v59 = vld [vmem:[#allocation97_spill] sm:$0xff] }
 0x2a5   :  { %v1768_v46 = vmul.f32 %v2182_v8, %v3481_v45  ;;  %v1816_v53 = vmul.f32 %v2182_v8, %v3487_v51  ;;  %2191 = vrcp.f32 %v1657_v32  ;;  %v1490_v23 = vmul.f32 1.442695, %v1467_v47  ;;  %v4053_v32 = vld [vmem:[#allocation57_spill] sm:$0xff] }
 0x2a6   :  { %v1878_v17 = vmul.f32 0.5, %v1862_v24  ;;  %v1799_v15 = vadd.f32 %v1783_v28, %v1751_v33  ;;  %v1704_v4 = vmul.f32 %v1688_v20, %v4046_v31  ;;  %v1736_v60 = vmul.f32 %v1720_v29, %v4047_v38  ;;  %v4054_v33 = vld [vmem:[#allocation56_spill] sm:$0xff] }
 0x2a7   :  { %v3558_v39 = vpop.eup %2183  ;;  %v1784_v3 = vmul.f32 %v1768_v46, %v4048_v25  ;;  %v1832_v30 = vmul.f32 %v1816_v53, %v4049_v10  ;;  %2193 = vpow2.f32 %v1442_v49  ;;  %v1515_v35 = vsub.f32 %v3504_v54, %v1403_v41 }
 0x2a8   :  { %v3563_v45 = vpop.eup %2185  ;;  %1894 = vst [vmem:[#allocation13 + $0x10] sm:$0xff] %v1878_v17  ;;  %v1847_v51 = vadd.f32 %v1831_v43, %v1799_v15  ;;  %v1752_v0 = vadd.f32 %v1736_v60, %v1704_v4  ;;  %2195 = vpow2.f32 %v1490_v23  ;;  %v1563_v7 = vsub.f32 %v3508_v61, %v1403_v41  ;;  %v4055_v15 = vld [vmem:[#allocation69_spill] sm:$0xff] }
 0x2a9   :  { %v3566_v1 = vpop.eup %2187  ;;  %v1626_v37 = vadd.f32 %v3563_v45, %v3558_v39  ;;  %v1538_v34 = vmul.f32 1.442695, %v1515_v35  ;;  %v1276_v48 = vmul.f32 0.25, %v1260_v9  ;;  %v1277_v5 = vmul.f32 0.25, %v1261_v44  ;;  %v4056_v4 = vld [vmem:[#allocation81_spill] sm:$0xff] }
 0x2aa   :  { %v1863_v42 = vadd.f32 %v2288_v19, %v1847_v51  ;;  %v1800_v52 = vadd.f32 %v1784_v3, %v1752_v0  ;;  %v1586_v54 = vmul.f32 1.442695, %v1563_v7  ;;  %v1280_v11 = vmul.f32 0.25, %v3448_v58  ;;  %v4059_v3 = vld [vmem:[#allocation76_spill] sm:$0xff]  ;;  %v4060_v0 = vld [vmem:[#allocation33_spill] sm:$0xff] }
 0x2ab   :  { %v3571_v22 = vpop.eup %2189  ;;  %v1642_v63 = vadd.f32 %v3566_v1, %v1626_v37  ;;  %2197 = vpow2.f32 %v1538_v34  ;;  %v1292_v61 = vmul.f32 2.0, %v1276_v48  ;;  %v1293_v41 = vmul.f32 2.0, %v1277_v5  ;;  %v4061_v37 = vld [vmem:[#allocation63_spill] sm:$0xff] }
 0x2ac   :  { %v1879_v6 = vmul.f32 0.5, %v1863_v42  ;;  %v1848_v55 = vadd.f32 %v1832_v30, %v1800_v52  ;;  %2199 = vpow2.f32 %v1586_v54  ;;  %v3576_v9 = vadd.f32 %v4051_v59, %v4050_v40  ;;  %v3620_v54 = vpop.xlane.xlu1 %1198 }
 0x2ad   :  { %v1658_v44 = vadd.f32 %v3571_v22, %v1642_v63  ;;  %v1308_v14 = vsub.f32 %v1292_v61, %v4039_v21  ;;  %v1324_v58 = vsub.f32 %v1292_v61, %v3395_v56  ;;  %v1296_v50 = vmul.f32 2.0, %v1280_v11 }
 0x2ae   :  { %1895 = vst [vmem:[#allocation13 + $0x18] sm:$0xff] %v1879_v6  ;;  %v1864_v28 = vadd.f32 %v2289_v2, %v1848_v55  ;;  %v1340_v8 = vsub.f32 %v1292_v61, %v4042_v57  ;;  %v1309_v43 = vsub.f32 %v1293_v41, %v4052_v62  ;;  %v3584_v49 = vsub.f32 %v1293_v41, %v4053_v32  ;;  %v4062_v6 = vld [vmem:[#allocation58_spill] sm:$0xff] }
 0x2af   :  { %v2192_v47 = vpop.eup %2191  ;;  %2201 = vrcp.f32 %v1658_v44  ;;  %v1356_v27 = vsub.f32 %v1292_v61, %v3331_v26  ;;  %v1372_v24 = vmax.f32 %v1308_v14, %v1324_v58  ;;  %v3588_v21 = vsub.f32 %v1293_v41, %v4054_v33  ;;  %v4063_v62 = vld [vmem:[#allocation98_spill] sm:$0xff]  ;;  %v2290_v33 = vld [vmem:[#allocation2 + $0x28] sm:$0xff] }
 0x2b0   :  { %v1880_v56 = vmul.f32 0.5, %v1864_v28  ;;  %v1689_v20 = vmul.f32 %v2192_v47, %v3518_v12  ;;  %v1721_v29 = vmul.f32 %v2192_v47, %v3524_v18  ;;  %v1769_v57 = vmul.f32 %v2192_v47, %v3529_v36  ;;  %v4057_v12 = vld [vmem:[#allocation92_spill] sm:$0xff] }
 0x2b1   :  { %v3593_v46 = vpop.eup %2193  ;;  %v1817_v53 = vmul.f32 %v2192_v47, %v3544_v16  ;;  %v1388_v23 = vmax.f32 %v1372_v24, %v1340_v8  ;;  %v1373_v17 = vmax.f32 %v1309_v43, %v3584_v49  ;;  %v3598_v26 = vsub.f32 %v1296_v50, %v4055_v15  ;;  %v4058_v36 = vld [vmem:[#allocation48_spill] sm:$0xff] }
 0x2b2   :  { %v3600_v31 = vpop.eup %2195  ;;  %1896 = vst [vmem:[#allocation13 + $0x20] sm:$0xff] %v1880_v56  ;;  %v1705_v38 = vmul.f32 %v1689_v20, %v4056_v4  ;;  %v1737_v60 = vmul.f32 %v1721_v29, %v4057_v12  ;;  %v1357_v18 = vsub.f32 %v1293_v41, %v3335_v13  ;;  %v3606_v25 = vsub.f32 %v1296_v50, %v4058_v36  ;;  %v4064_v4 = vld [vmem:[#allocation83_spill] sm:$0xff] }
 0x2b3   :  { %v1785_v16 = vmul.f32 %v1769_v57, %v4059_v3  ;;  %v1627_v10 = vadd.f32 %v3600_v31, %v3593_v46  ;;  %v1404_v30 = vmax.f32 %v1388_v23, %v1356_v27  ;;  %v1389_v35 = vmax.f32 %v1373_v17, %v3588_v21 }
 0x2b4   :  { %v1753_v51 = vadd.f32 %v1737_v60, %v1705_v38  ;;  %v1833_v7 = vmul.f32 %v1817_v53, %v4060_v0  ;;  %v3614_v34 = vsub.f32 %v1296_v50, %v4061_v37  ;;  %v1376_v13 = vmax.f32 %v3598_v26, %v3606_v25  ;;  %v3637_v53 = vpop.xlane.xlu0 %1096  ;;  %v4065_v38 = vld [vmem:[#allocation93_spill] sm:$0xff]  ;;  %v3642_v60 = vpop.xlane.xlu1 %1098 }
 0x2b5   :  { %v3618_v48 = vpop.eup %2197  ;;  %v1420_v5 = vsub.f32 %v1308_v14, %v1404_v30  ;;  %v1468_v19 = vsub.f32 %v1324_v58, %v1404_v30  ;;  %v1516_v42 = vsub.f32 %v1340_v8, %v1404_v30  ;;  %v1564_v52 = vsub.f32 %v1356_v27, %v1404_v30  ;;  %v4068_v30 = vld [vmem:[#allocation65_spill] sm:$0xff] }
 0x2b6   :  { %v3622_v11 = vpop.eup %2199  ;;  %v1801_v63 = vadd.f32 %v1785_v16, %v1753_v51  ;;  %v1643_v61 = vadd.f32 %v3618_v48, %v1627_v10  ;;  %v1405_v41 = vmax.f32 %v1389_v35, %v1357_v18  ;;  %v3626_v55 = vsub.f32 %v1296_v50, %v4062_v6  ;;  %v4069_v51 = vld [vmem:[#allocation66_spill] sm:$0xff] }
 0x2b7   :  { %v1444_v59 = vmul.f32 1.442695, %v1420_v5  ;;  %v1492_v44 = vmul.f32 1.442695, %v1468_v19  ;;  %v1540_v2 = vmul.f32 1.442695, %v1516_v42  ;;  %v1392_v28 = vmax.f32 %v1376_v13, %v3614_v34 }
 0x2b8   :  { %v1849_v14 = vadd.f32 %v1833_v7, %v1801_v63  ;;  %v1659_v58 = vadd.f32 %v3622_v11, %v1643_v61  ;;  %v1421_v8 = vsub.f32 %v1309_v43, %v1405_v41  ;;  %v1265_v32 = vadd.f32 %v4063_v62, %v3620_v54  ;;  %v3653_v5 = vpop.xlane.xlu0 %1200 }
 0x2b9   :  { %v2202_v47 = vpop.eup %2201  ;;  %2203 = vpow2.f32 %v1444_v59  ;;  %v1588_v27 = vmul.f32 1.442695, %v1564_v52  ;;  %v1469_v24 = vsub.f32 %v3584_v49, %v1405_v41  ;;  %v1517_v50 = vsub.f32 %v3588_v21, %v1405_v41 }
 0x2ba   :  { %v1865_v56 = vadd.f32 %v2290_v33, %v1849_v14  ;;  %v1690_v20 = vmul.f32 %v2202_v47, %v3558_v39  ;;  %v1722_v29 = vmul.f32 %v2202_v47, %v3563_v45  ;;  %v1770_v57 = vmul.f32 %v2202_v47, %v3566_v1  ;;  %v4066_v39 = vld [vmem:[#allocation77_spill] sm:$0xff]  ;;  %v4067_v45 = vld [vmem:[#allocation34_spill] sm:$0xff] }
 0x2bb   :  { %v1818_v43 = vmul.f32 %v2202_v47, %v3571_v22  ;;  %2205 = vrcp.f32 %v1659_v58  ;;  %v1446_v23 = vmul.f32 1.442695, %v1421_v8  ;;  %v1565_v17 = vsub.f32 %v1357_v18, %v1405_v41  ;;  %v4071_v14 = vld [vmem:[#allocation49_spill] sm:$0xff]  ;;  %v4072_v8 = vld [vmem:[#allocation64_spill] sm:$0xff] }
 0x2bc   :  { %v1881_v15 = vmul.f32 0.5, %v1865_v56  ;;  %v1706_v49 = vmul.f32 %v1690_v20, %v4064_v4  ;;  %v1738_v21 = vmul.f32 %v1722_v29, %v4065_v38  ;;  %v1494_v12 = vmul.f32 1.442695, %v1469_v24 }
 0x2bd   :  { %v1786_v36 = vmul.f32 %v1770_v57, %v4066_v39  ;;  %v1834_v3 = vmul.f32 %v1818_v43, %v4067_v45  ;;  %2207 = vpow2.f32 %v1492_v44  ;;  %v1542_v1 = vmul.f32 1.442695, %v1517_v50  ;;  %v4070_v44 = vld [vmem:[#allocation70_spill] sm:$0xff] }
 0x2be   :  { %1897 = vst [vmem:[#allocation13 + $0x28] sm:$0xff] %v1881_v15  ;;  %v1754_v16 = vadd.f32 %v1738_v21, %v1706_v49  ;;  %2209 = vpow2.f32 %v1540_v2  ;;  %v1408_v22 = vmax.f32 %v1392_v28, %v3626_v55  ;;  %v1281_v18 = vmul.f32 0.25, %v1265_v32  ;;  %v2291_v2 = vld [vmem:[#allocation2 + $0x30] sm:$0xff]  ;;  %v4073_v32 = vld [vmem:[#allocation59_spill] sm:$0xff]  ;;  %v4075_v43 = vld [vmem:[#allocation54_spill] sm:$0xff] }
 0x2bf   :  { %2211 = vpow2.f32 %v1588_v27  ;;  %v1590_v10 = vmul.f32 1.442695, %v1565_v17  ;;  %v1230_v35 = vadd.f32 %v3637_v53, %v4068_v30  ;;  %v1231_v0 = vadd.f32 %v3642_v60, %v4069_v51  ;;  %v4074_v27 = vld [vmem:[#allocation60_spill] sm:$0xff]  ;;  %v4077_v49 = vld [vmem:[#allocation94_spill] sm:$0xff] }
 0x2c0   :  { %v1802_v7 = vadd.f32 %v1786_v36, %v1754_v16  ;;  %2213 = vpow2.f32 %v1446_v23  ;;  %v1424_v37 = vsub.f32 %v3598_v26, %v1408_v22  ;;  %v1472_v13 = vsub.f32 %v3606_v25, %v1408_v22  ;;  %v4076_v15 = vld [vmem:[#allocation84_spill] sm:$0xff] }
 0x2c1   :  { %2215 = vpow2.f32 %v1494_v12  ;;  %v1520_v19 = vsub.f32 %v3614_v34, %v1408_v22  ;;  %v1568_v42 = vsub.f32 %v3626_v55, %v1408_v22  ;;  %v1297_v52 = vmul.f32 2.0, %v1281_v18  ;;  %v4081_v18 = vld [vmem:[#allocation50_spill] sm:$0xff] }
 0x2c2   :  { %v1850_v63 = vadd.f32 %v1834_v3, %v1802_v7  ;;  %2217 = vpow2.f32 %v1542_v1  ;;  %v1452_v61 = vmul.f32 1.442695, %v1424_v37  ;;  %v1500_v41 = vmul.f32 1.442695, %v1472_v13  ;;  %v4080_v1 = vld [vmem:[#allocation78_spill] sm:$0xff] }
 0x2c3   :  { %v3657_v6 = vpop.eup %2203  ;;  %2219 = vpow2.f32 %v1590_v10  ;;  %v1548_v59 = vmul.f32 1.442695, %v1520_v19  ;;  %v1313_v26 = vsub.f32 %v1297_v52, %v4070_v44  ;;  %v1266_v25 = vadd.f32 %v3576_v9, %v3653_v5 }
 0x2c4   :  { %v1866_v28 = vadd.f32 %v2291_v2, %v1850_v63  ;;  %2221 = vpow2.f32 %v1452_v61  ;;  %v1596_v34 = vmul.f32 1.442695, %v1568_v42  ;;  %v1329_v55 = vsub.f32 %v1297_v52, %v4071_v14 }
 0x2c5   :  { %v2206_v58 = vpop.eup %2205  ;;  %2223 = vpow2.f32 %v1500_v41  ;;  %v1345_v62 = vsub.f32 %v1297_v52, %v4072_v8  ;;  %v1246_v47 = vadd.f32 %v1230_v35, %v4073_v32  ;;  %v1247_v24 = vadd.f32 %v1231_v0, %v4074_v27  ;;  %v4082_v0 = vld [vmem:[#allocation35_spill] sm:$0xff]  ;;  %v3697_v41 = vpop.xlane.xlu1 %1202 }
 0x2c6   :  { %v1882_v50 = vmul.f32 0.5, %v1866_v28  ;;  %v1691_v33 = vmul.f32 %v2206_v58, %v3593_v46  ;;  %v1723_v56 = vmul.f32 %v2206_v58, %v3600_v31  ;;  %v1771_v9 = vmul.f32 %v2206_v58, %v3618_v48  ;;  %v4078_v31 = vld [vmem:[#allocation68_spill] sm:$0xff]  ;;  %v4079_v48 = vld [vmem:[#allocation51_spill] sm:$0xff] }
 0x2c7   :  { %v3669_v20 = vpop.eup %2207  ;;  %v1819_v29 = vmul.f32 %v2206_v58, %v3622_v11  ;;  %2225 = vpow2.f32 %v1548_v59  ;;  %v1377_v57 = vmax.f32 %v1313_v26, %v1329_v55  ;;  %v1262_v23 = vadd.f32 %v1246_v47, %v4075_v43 }
 0x2c8   :  { %v3673_v17 = vpop.eup %2209  ;;  %1898 = vst [vmem:[#allocation13 + $0x30] sm:$0xff] %v1882_v50  ;;  %v1707_v4 = vmul.f32 %v1691_v33, %v4076_v15  ;;  %v1739_v38 = vmul.f32 %v1723_v56, %v4077_v49  ;;  %v1628_v46 = vadd.f32 %v3669_v20, %v3657_v6  ;;  %v1251_v21 = vadd.f32 %v4079_v48, %v4078_v31 }
 0x2c9   :  { %v3681_v12 = vpop.eup %2211  ;;  %2227 = vpow2.f32 %v1596_v34  ;;  %v1361_v11 = vsub.f32 %v1297_v52, %v3620_v54  ;;  %v1393_v39 = vmax.f32 %v1377_v57, %v1345_v62  ;;  %v1278_v36 = vmul.f32 0.25, %v1262_v23 }
 0x2ca   :  { %v3684_v45 = vpop.eup %2213  ;;  %v1755_v3 = vadd.f32 %v1739_v38, %v1707_v4  ;;  %v1787_v16 = vmul.f32 %v1771_v9, %v4080_v1  ;;  %v1644_v22 = vadd.f32 %v3673_v17, %v1628_v46  ;;  %v1263_v10 = vadd.f32 %v1247_v24, %v4081_v18 }
 0x2cb   :  { %v3689_v35 = vpop.eup %2215  ;;  %v1835_v7 = vmul.f32 %v1819_v29, %v4082_v0  ;;  %v1409_v37 = vmax.f32 %v1393_v39, %v1361_v11  ;;  %v1294_v13 = vmul.f32 2.0, %v1278_v36  ;;  %v1282_v19 = vmul.f32 0.25, %v1266_v25 }
 0x2cc   :  { %v3692_v42 = vpop.eup %2217  ;;  %v1803_v54 = vadd.f32 %v1787_v16, %v1755_v3  ;;  %v1660_v52 = vadd.f32 %v3681_v12, %v1644_v22  ;;  %v1629_v63 = vadd.f32 %v3689_v35, %v3684_v45  ;;  %v1279_v61 = vmul.f32 0.25, %v1263_v10  ;;  %v4083_v16 = vld [vmem:[#allocation71_spill] sm:$0xff]  ;;  %v4084_v10 = vld [vmem:[#allocation46_spill] sm:$0xff] }
 0x2cd   :  { %v3699_v59 = vpop.eup %2219  ;;  %v1425_v44 = vsub.f32 %v1313_v26, %v1409_v37  ;;  %v1473_v2 = vsub.f32 %v1329_v55, %v1409_v37  ;;  %v1521_v28 = vsub.f32 %v1345_v62, %v1409_v37  ;;  %v1569_v34 = vsub.f32 %v1361_v11, %v1409_v37  ;;  %v2292_v26 = vld [vmem:[#allocation2 + $0x38] sm:$0xff] }
 0x2ce   :  { %v3701_v14 = vpop.eup %2221  ;;  %v1851_v25 = vadd.f32 %v1835_v7, %v1803_v54  ;;  %2229 = vrcp.f32 %v1660_v52  ;;  %v1645_v58 = vadd.f32 %v3692_v42, %v1629_v63  ;;  %v1310_v8 = vsub.f32 %v1294_v13, %v4068_v30 }
 0x2cf   :  { %v3705_v47 = vpop.eup %2223  ;;  %v1454_v24 = vmul.f32 1.442695, %v1425_v44  ;;  %v1502_v50 = vmul.f32 1.442695, %v1473_v2  ;;  %v1326_v33 = vsub.f32 %v1294_v13, %v3637_v53  ;;  %v1267_v56 = vadd.f32 %v1251_v21, %v3697_v41 }
 0x2d0   :  { %v1867_v55 = vadd.f32 %v2292_v26, %v1851_v25  ;;  %v1661_v62 = vadd.f32 %v3699_v59, %v1645_v58  ;;  %v1632_v9 = vadd.f32 %v3705_v47, %v3701_v14  ;;  %v1550_v29 = vmul.f32 1.442695, %v1521_v28 }
 0x2d1   :  { %v3712_v57 = vpop.eup %2225  ;;  %2231 = vpow2.f32 %v1454_v24  ;;  %v1598_v30 = vmul.f32 1.442695, %v1569_v34  ;;  %v1342_v23 = vsub.f32 %v1294_v13, %v4073_v32  ;;  %v1374_v15 = vmax.f32 %v1310_v8, %v1326_v33  ;;  %v4086_v24 = vld [vmem:[#allocation95_spill] sm:$0xff] }
 0x2d2   :  { %v1883_v4 = vmul.f32 0.5, %v1867_v55  ;;  %2233 = vrcp.f32 %v1661_v62  ;;  %v1648_v53 = vadd.f32 %v3712_v57, %v1632_v9  ;;  %v1295_v49 = vmul.f32 2.0, %v1279_v61 }
 0x2d3   :  { %v3716_v38 = vpop.eup %2227  ;;  %2235 = vpow2.f32 %v1502_v50  ;;  %v1358_v46 = vsub.f32 %v1294_v13, %v4075_v43  ;;  %v1390_v48 = vmax.f32 %v1374_v15, %v1342_v23  ;;  %v3719_v21 = vmul.f32 2.0, %v1282_v19 }
 0x2d4   :  { %1899 = vst [vmem:[#allocation13 + $0x38] sm:$0xff] %v1883_v4  ;;  %v1664_v11 = vadd.f32 %v3716_v38, %v1648_v53  ;;  %2237 = vpow2.f32 %v1550_v29  ;;  %v1311_v32 = vsub.f32 %v1295_v49, %v4069_v51  ;;  %v1327_v39 = vsub.f32 %v1295_v49, %v3642_v60 }
 0x2d5   :  { %2239 = vpow2.f32 %v1598_v30  ;;  %v1406_v36 = vmax.f32 %v1390_v48, %v1358_v46  ;;  %v3725_v3 = vsub.f32 %v1295_v49, %v4074_v27  ;;  %v3727_v1 = vmul.f32 0.25, %v1267_v56  ;;  %v4088_v56 = vld [vmem:[#allocation36_spill] sm:$0xff] }
 0x2d6   :  { %2241 = vrcp.f32 %v1664_v11  ;;  %v1375_v43 = vmax.f32 %v1311_v32, %v1327_v39  ;;  %v3731_v22 = vsub.f32 %v3719_v21, %v4083_v16  ;;  %v3735_v0 = vsub.f32 %v3719_v21, %v4084_v10  ;;  %v4089_v11 = vld [vmem:[#allocation87_spill] sm:$0xff] }
 0x2d7   :  { %v1422_v51 = vsub.f32 %v1310_v8, %v1406_v36  ;;  %v1470_v7 = vsub.f32 %v1326_v33, %v1406_v36  ;;  %v1518_v60 = vsub.f32 %v1342_v23, %v1406_v36  ;;  %v3738_v37 = vsub.f32 %v1295_v49, %v4081_v18  ;;  %v4087_v33 = vld [vmem:[#allocation80_spill] sm:$0xff] }
 0x2d8   :  { %v2230_v27 = vpop.eup %2229  ;;  %v1566_v13 = vsub.f32 %v1358_v46, %v1406_v36  ;;  %v1391_v19 = vmax.f32 %v1375_v43, %v3725_v3  ;;  %v3743_v54 = vsub.f32 %v3719_v21, %v4050_v40  ;;  %v1378_v52 = vmax.f32 %v3731_v22, %v3735_v0  ;;  %v4085_v40 = vld [vmem:[#allocation85_spill] sm:$0xff]  ;;  %v4091_v36 = vld [vmem:[#allocation82_spill] sm:$0xff] }
 0x2d9   :  { %v1692_v63 = vmul.f32 %v2230_v27, %v3657_v6  ;;  %v1724_v61 = vmul.f32 %v2230_v27, %v3669_v20  ;;  %v1772_v44 = vmul.f32 %v2230_v27, %v3673_v17  ;;  %v1820_v18 = vmul.f32 %v2230_v27, %v3681_v12 }
 0x2da   :  { %v1448_v2 = vmul.f32 1.442695, %v1422_v51  ;;  %v1496_v28 = vmul.f32 1.442695, %v1470_v7  ;;  %v1544_v34 = vmul.f32 1.442695, %v1518_v60  ;;  %v3752_v25 = vmax.f32 %v1391_v19, %v3738_v37 }
 0x2db   :  { %v3754_v58 = vpop.eup %2231  ;;  %v1708_v8 = vmul.f32 %v1692_v63, %v4085_v40  ;;  %v1740_v50 = vmul.f32 %v1724_v61, %v4086_v24  ;;  %v1788_v6 = vmul.f32 %v1772_v44, %v4087_v33  ;;  %v1836_v20 = vmul.f32 %v1820_v18, %v4088_v56  ;;  %v2293_v61 = vld [vmem:[#allocation2 + $0x40] sm:$0xff] }
 0x2dc   :  { %v2234_v26 = vpop.eup %2233  ;;  %2243 = vpow2.f32 %v1448_v2  ;;  %v1592_v17 = vmul.f32 1.442695, %v1566_v13  ;;  %v1423_v12 = vsub.f32 %v1311_v32, %v3752_v25  ;;  %v1471_v55 = vsub.f32 %v1327_v39, %v3752_v25  ;;  %v4090_v39 = vld [vmem:[#allocation96_spill] sm:$0xff] }
 0x2dd   :  { %v3762_v62 = vpop.eup %2235  ;;  %v1756_v9 = vadd.f32 %v1740_v50, %v1708_v8  ;;  %v1693_v29 = vmul.f32 %v2234_v26, %v3684_v45  ;;  %v1725_v30 = vmul.f32 %v2234_v26, %v3689_v35  ;;  %v1773_v23 = vmul.f32 %v2234_v26, %v3692_v42  ;;  %v4092_v42 = vld [vmem:[#allocation37_spill] sm:$0xff]  ;;  %v4093_v2 = vld [vmem:[#allocation88_spill] sm:$0xff]  ;;  %v4095_v8 = vld [vmem:[#allocation86_spill] sm:$0xff] }
 0x2de   :  { %v3767_v15 = vpop.eup %2237  ;;  %v1821_v4 = vmul.f32 %v2234_v26, %v3699_v59  ;;  %v1633_v53 = vadd.f32 %v3762_v62, %v3754_v58  ;;  %2245 = vpow2.f32 %v1496_v28  ;;  %v1450_v49 = vmul.f32 1.442695, %v1423_v12 }
 0x2df   :  { %v3772_v46 = vpop.eup %2239  ;;  %v1804_v48 = vadd.f32 %v1788_v6, %v1756_v9  ;;  %v1709_v32 = vmul.f32 %v1693_v29, %v4089_v11  ;;  %v1741_v45 = vmul.f32 %v1725_v30, %v4090_v39  ;;  %v1789_v35 = vmul.f32 %v1773_v23, %v4091_v36  ;;  %v4099_v36 = vld [vmem:[#allocation19_spill] sm:$0xff] }
 0x2e0   :  { %v2242_v43 = vpop.eup %2241  ;;  %v1837_v16 = vmul.f32 %v1821_v4, %v4092_v42  ;;  %v1649_v10 = vadd.f32 %v3767_v15, %v1633_v53  ;;  %2247 = vpow2.f32 %v1544_v34  ;;  %v1498_v59 = vmul.f32 1.442695, %v1471_v55  ;;  %v4094_v34 = vld [vmem:[#allocation73_spill] sm:$0xff]  ;;  %v4097_v53 = vld [vmem:[#allocation72_spill] sm:$0xff] }
 0x2e1   :  { %v1852_v51 = vadd.f32 %v1836_v20, %v1804_v48  ;;  %v1757_v7 = vadd.f32 %v1741_v45, %v1709_v32  ;;  %v1696_v60 = vmul.f32 %v2242_v43, %v3701_v14  ;;  %v1728_v27 = vmul.f32 %v2242_v43, %v3705_v47  ;;  %v4098_v32 = vld [vmem:[#allocation47_spill] sm:$0xff] }
 0x2e2   :  { %v1776_v13 = vmul.f32 %v2242_v43, %v3712_v57  ;;  %v1824_v19 = vmul.f32 %v2242_v43, %v3716_v38  ;;  %v1665_v63 = vadd.f32 %v3772_v46, %v1649_v10  ;;  %2249 = vpow2.f32 %v1592_v17 }
 0x2e3   :  { %v1868_v44 = vadd.f32 %v2293_v61, %v1852_v51  ;;  %v1805_v18 = vadd.f32 %v1789_v35, %v1757_v7  ;;  %v1712_v28 = vmul.f32 %v1696_v60, %v4093_v2  ;;  %v1744_v40 = vmul.f32 %v1728_v27, %v4094_v34  ;;  %v4100_v35 = vld [vmem:[#allocation20_spill] sm:$0xff]  ;;  %v4102_v60 = vld [vmem:[#allocation30_spill] sm:$0xff] }
 0x2e4   :  { %v1792_v24 = vmul.f32 %v1776_v13, %v4095_v8  ;;  %2251 = vrcp.f32 %v1665_v63  ;;  %v1519_v14 = vsub.f32 %v3725_v3, %v3752_v25  ;;  %v1362_v47 = vsub.f32 %v3719_v21, %v3653_v5  ;;  %v2294_v3 = vld [vmem:[#allocation2 + $0x48] sm:$0xff] }
 0x2e5   :  { %v1884_v57 = vmul.f32 0.5, %v1868_v44  ;;  %v1853_v38 = vadd.f32 %v1837_v16, %v1805_v18  ;;  %v1760_v50 = vadd.f32 %v1744_v40, %v1712_v28  ;;  %2253 = vpow2.f32 %v1450_v49  ;;  %v4096_v21 = vld [vmem:[#allocation40_spill] sm:$0xff] }
 0x2e6   :  { %v3791_v33 = vpop.eup %2243  ;;  %2255 = vpow2.f32 %v1498_v59  ;;  %v1546_v6 = vmul.f32 1.442695, %v1519_v14  ;;  %v1567_v56 = vsub.f32 %v3738_v37, %v3752_v25  ;;  %v1394_v20 = vmax.f32 %v1378_v52, %v3743_v54 }
 0x2e7   :  { %1900 = vst [vmem:[#allocation13 + $0x40] sm:$0xff] %v1884_v57  ;;  %v1869_v26 = vadd.f32 %v2294_v3, %v1853_v38  ;;  %v1808_v5 = vadd.f32 %v1792_v24, %v1760_v50  ;;  %v1840_v17 = vmul.f32 %v1824_v19, %v4096_v21  ;;  %v1299_v12 = vmul.f32 2.0, %v3727_v1  ;;  %v2295_v1 = vld [vmem:[#allocation2 + $0x60] sm:$0xff] }
 0x2e8   :  { %v3801_v55 = vpop.eup %2245  ;;  %v1594_v9 = vmul.f32 1.442695, %v1567_v56  ;;  %v1410_v29 = vmax.f32 %v1394_v20, %v1362_v47  ;;  %2257 = vpow2.f32 %v1546_v6  ;;  %v840_v43 = vadd.f32 %v4100_v35, %v4099_v36 }
 0x2e9   :  { %v1885_v30 = vmul.f32 0.5, %v1869_v26  ;;  %v1856_v23 = vadd.f32 %v1840_v17, %v1808_v5  ;;  %v1630_v37 = vadd.f32 %v3801_v55, %v3791_v33  ;;  %v1315_v49 = vsub.f32 %v1299_v12, %v4097_v53 }
 0x2ea   :  { %v3805_v25 = vpop.eup %2247  ;;  %v1426_v52 = vsub.f32 %v3731_v22, %v1410_v29  ;;  %v1474_v4 = vsub.f32 %v3735_v0, %v1410_v29  ;;  %2259 = vpow2.f32 %v1594_v9  ;;  %v1331_v39 = vsub.f32 %v1299_v12, %v4098_v32  ;;  %v4101_v0 = vld [vmem:[#allocation25_spill] sm:$0xff] }
 0x2eb   :  { %1901 = vst [vmem:[#allocation13 + $0x48] sm:$0xff] %v1885_v30  ;;  %v1872_v48 = vadd.f32 %v2295_v1, %v1856_v23  ;;  %v1646_v11 = vadd.f32 %v3805_v25, %v1630_v37  ;;  %v1522_v22 = vsub.f32 %v3743_v54, %v1410_v29  ;;  %v920_v16 = vadd.f32 %v4101_v0, %v4099_v36  ;;  %v2296_v30 = vld [vmem:[#allocation2 + $0x68] sm:$0xff] }
 0x2ec   :  { %v3812_v45 = vpop.eup %2249  ;;  %v1456_v42 = vmul.f32 1.442695, %v1426_v52  ;;  %v1570_v51 = vsub.f32 %v1362_v47, %v1410_v29  ;;  %v760_v27 = vadd.f32 %v4102_v60, %v4099_v36  ;;  %v1504_v13 = vmul.f32 1.442695, %v1474_v4  ;;  %v4104_v4 = vld [vmem:[#allocation26_spill] sm:$0xff] }
 0x2ed   :  { %v1888_v10 = vmul.f32 0.5, %v1872_v48  ;;  %v1662_v59 = vadd.f32 %v3812_v45, %v1646_v11  ;;  %v1347_v19 = vsub.f32 %v1299_v12, %v4078_v31  ;;  %v1379_v63 = vmax.f32 %v1315_v49, %v1331_v39 }
 0x2ee   :  { %v2252_v7 = vpop.eup %2251  ;;  %2261 = vpow2.f32 %v1456_v42  ;;  %v1552_v28 = vmul.f32 1.442695, %v1522_v22  ;;  %v1363_v34 = vsub.f32 %v1299_v12, %v3697_v41  ;;  %v1600_v14 = vmul.f32 1.442695, %v1570_v51  ;;  %v4106_v42 = vld [vmem:[#allocation23_spill] sm:$0xff] }
 0x2ef   :  { %v3823_v61 = vpop.eup %2253  ;;  %1904 = vst [vmem:[#allocation13 + $0x60] sm:$0xff] %v1888_v10  ;;  %v1697_v54 = vmul.f32 %v2252_v7, %v3754_v58  ;;  %v1729_v44 = vmul.f32 %v2252_v7, %v3762_v62  ;;  %v1777_v18 = vmul.f32 %v2252_v7, %v3767_v15  ;;  %2263 = vrcp.f32 %v1662_v59  ;;  %v4103_v15 = vld [vmem:[#allocation41_spill] sm:$0xff] }
 0x2f0   :  { %v3828_v2 = vpop.eup %2255  ;;  %v1395_v40 = vmax.f32 %v1379_v63, %v1347_v19  ;;  %v1825_v24 = vmul.f32 %v2252_v7, %v3772_v46  ;;  %2265 = vpow2.f32 %v1504_v13  ;;  %v1000_v57 = vadd.f32 %v4103_v15, %v4099_v36  ;;  %v4107_v7 = vld [vmem:[#allocation38_spill] sm:$0xff]  ;;  %v2297_v15 = vld [vmem:[#allocation2 + $0x50] sm:$0xff] }
 0x2f1   :  { %v1713_v8 = vmul.f32 %v1697_v54, %v760_v27  ;;  %v1745_v31 = vmul.f32 %v1729_v44, %v840_v43  ;;  %v1631_v58 = vadd.f32 %v3828_v2, %v3823_v61  ;;  %v1793_v50 = vmul.f32 %v1777_v18, %v920_v16  ;;  %v4109_v18 = vld [vmem:[#allocation44_spill] sm:$0xff] }
 0x2f2   :  { %v1411_v62 = vmax.f32 %v1395_v40, %v1363_v34  ;;  %v2258_v47 = vpop.eup %2257  ;;  %2267 = vpow2.f32 %v1552_v28  ;;  %v1841_v26 = vmul.f32 %v1825_v24, %v1000_v57  ;;  %v746_v53 = vadd.f32 %v4104_v4, %v4099_v36  ;;  %v4113_v4 = vld [vmem:[#allocation31_spill] sm:$0xff] }
 0x2f3   :  { %v1761_v38 = vadd.f32 %v1745_v31, %v1713_v8  ;;  %v1647_v6 = vadd.f32 %v2258_v47, %v1631_v58  ;;  %2269 = vpow2.f32 %v1600_v14  ;;  %v906_v22 = vadd.f32 %v4106_v42, %v4099_v36  ;;  %v4110_v58 = vld [vmem:[#allocation24_spill] sm:$0xff] }
 0x2f4   :  { %v1427_v41 = vsub.f32 %v1315_v49, %v1411_v62  ;;  %v1475_v56 = vsub.f32 %v1331_v39, %v1411_v62  ;;  %v2260_v20 = vpop.eup %2259  ;;  %v1523_v46 = vsub.f32 %v1347_v19, %v1411_v62  ;;  %v1571_v12 = vsub.f32 %v1363_v34, %v1411_v62  ;;  %v4105_v49 = vld [vmem:[#allocation42_spill] sm:$0xff] }
 0x2f5   :  { %v1809_v3 = vadd.f32 %v1793_v50, %v1761_v38  ;;  %v1663_v5 = vadd.f32 %v2260_v20, %v1647_v6  ;;  %v826_v1 = vadd.f32 %v4105_v49, %v4099_v36  ;;  %v830_v28 = vadd.f32 %v4109_v18, %v4099_v36 }
 0x2f6   :  { %v1458_v21 = vmul.f32 1.442695, %v1427_v41  ;;  %v1506_v17 = vmul.f32 1.442695, %v1475_v56  ;;  %v1554_v37 = vmul.f32 1.442695, %v1523_v46  ;;  %v910_v62 = vadd.f32 %v4110_v58, %v4099_v36 }
 0x2f7   :  { %v1857_v9 = vadd.f32 %v1841_v26, %v1809_v3  ;;  %2271 = vrcp.f32 %v1663_v5  ;;  %v1602_v48 = vmul.f32 1.442695, %v1571_v12  ;;  %v4111_v3 = vld [vmem:[#allocation39_spill] sm:$0xff] }
 0x2f8   :  { %v3836_v29 = vpop.eup %2261  ;;  %2273 = vpow2.f32 %v1458_v21  ;;  %v990_v26 = vadd.f32 %v4111_v3, %v4099_v36 }
 0x2f9   :  { %v1873_v23 = vadd.f32 %v2296_v30, %v1857_v9  ;;  %v2264_v52 = vpop.eup %2263  ;;  %2275 = vpow2.f32 %v1506_v17  ;;  %v2298_v30 = vld [vmem:[#allocation2 + $0x58] sm:$0xff] }
 0x2fa   :  { %v1694_v32 = vmul.f32 %v2264_v52, %v3791_v33  ;;  %v1726_v39 = vmul.f32 %v2264_v52, %v3801_v55  ;;  %v1774_v35 = vmul.f32 %v2264_v52, %v3805_v25  ;;  %v2266_v43 = vpop.eup %2265  ;;  %v1822_v0 = vmul.f32 %v2264_v52, %v3812_v45  ;;  %v4108_v45 = vld [vmem:[#allocation28_spill] sm:$0xff] }
 0x2fb   :  { %v1889_v11 = vmul.f32 0.5, %v1873_v23  ;;  %v1634_v59 = vadd.f32 %v2266_v43, %v3836_v29  ;;  %2277 = vpow2.f32 %v1554_v37  ;;  %v986_v33 = vadd.f32 %v4107_v7, %v4099_v36 }
 0x2fc   :  { %v1710_v16 = vmul.f32 %v1694_v32, %v746_v53  ;;  %v1742_v10 = vmul.f32 %v1726_v39, %v826_v1  ;;  %v2268_v51 = vpop.eup %2267  ;;  %v1790_v27 = vmul.f32 %v1774_v35, %v906_v22  ;;  %2279 = vpow2.f32 %v1602_v48  ;;  %v4114_v32 = vld [vmem:[#allocation27_spill] sm:$0xff] }
 0x2fd   :  { %1905 = vst [vmem:[#allocation13 + $0x68] sm:$0xff] %v1889_v11  ;;  %v2270_v60 = vpop.eup %2269  ;;  %v1650_v25 = vadd.f32 %v2268_v51, %v1634_v59  ;;  %v1838_v19 = vmul.f32 %v1822_v0, %v986_v33  ;;  %v750_v44 = vadd.f32 %v4108_v45, %v4099_v36  ;;  %v766_v53 = vadd.f32 %v4113_v4, %v4099_v36  ;;  %v4115_v0 = vld [vmem:[#allocation43_spill] sm:$0xff]  ;;  %v2299_v45 = vld [vmem:[#allocation2 + $0x70] sm:$0xff] }
 0x2fe   :  { %v1758_v55 = vadd.f32 %v1742_v10, %v1710_v16  ;;  %v926_v39 = vadd.f32 %v4114_v32, %v4099_v36  ;;  %v1006_v16 = vadd.f32 %v4115_v0, %v4099_v36 }
 0x2ff   :  { %v1666_v63 = vadd.f32 %v2270_v60, %v1650_v25 }
 0x300   :  { %v1806_v13 = vadd.f32 %v1790_v27, %v1758_v55  ;;  %v4116_v27 = vld [vmem:[#allocation22_spill] sm:$0xff] }
 0x301   :  { %v2272_v54 = vpop.eup %2271  ;;  %2281 = vrcp.f32 %v1666_v63 }
 0x302   :  { %v2274_v34 = vpop.eup %2273  ;;  %v1854_v40 = vadd.f32 %v1838_v19, %v1806_v13  ;;  %v1695_v8 = vmul.f32 %v2272_v54, %v3823_v61  ;;  %v1727_v31 = vmul.f32 %v2272_v54, %v3828_v2  ;;  %v1775_v24 = vmul.f32 %v2272_v54, %v2258_v47 }
 0x303   :  { %v2276_v14 = vpop.eup %2275  ;;  %v1823_v6 = vmul.f32 %v2272_v54, %v2260_v20  ;;  %v4112_v20 = vld [vmem:[#allocation21_spill] sm:$0xff] }
 0x304   :  { %v1870_v57 = vadd.f32 %v2297_v15, %v1854_v40  ;;  %v1711_v38 = vmul.f32 %v1695_v8, %v750_v44  ;;  %v1743_v50 = vmul.f32 %v1727_v31, %v830_v28  ;;  %v1635_v41 = vadd.f32 %v2276_v14, %v2274_v34  ;;  %v4119_v8 = vld [vmem:[#allocation45_spill] sm:$0xff] }
 0x305   :  { %v2278_v56 = vpop.eup %2277  ;;  %v1791_v5 = vmul.f32 %v1775_v24, %v910_v62  ;;  %v1839_v17 = vmul.f32 %v1823_v6, %v990_v26  ;;  %v846_v52 = vadd.f32 %v4112_v20, %v4099_v36  ;;  %v1010_v31 = vadd.f32 %v4119_v8, %v4099_v36 }
 0x306   :  { %v1886_v46 = vmul.f32 0.5, %v1870_v57  ;;  %v1759_v61 = vadd.f32 %v1743_v50, %v1711_v38  ;;  %v1651_v2 = vadd.f32 %v2278_v56, %v1635_v41  ;;  %v2280_v47 = vpop.eup %2279 }
 0x308   :  { %1902 = vst [vmem:[#allocation13 + $0x50] sm:$0xff] %v1886_v46  ;;  %v1807_v21 = vadd.f32 %v1791_v5, %v1759_v61  ;;  %v1667_v12 = vadd.f32 %v2280_v47, %v1651_v2 }
 0x30a   :  { %v1855_v9 = vadd.f32 %v1839_v17, %v1807_v21  ;;  %2283 = vrcp.f32 %v1667_v12 }
 0x30b   :  { %v2282_v37 = vpop.eup %2281 }
 0x30c   :  { %v1871_v23 = vadd.f32 %v2298_v30, %v1855_v9  ;;  %v1698_v1 = vmul.f32 %v2282_v37, %v3836_v29  ;;  %v1730_v48 = vmul.f32 %v2282_v37, %v2266_v43  ;;  %v1778_v11 = vmul.f32 %v2282_v37, %v2268_v51  ;;  %v4117_v43 = vld [vmem:[#allocation32_spill] sm:$0xff] }
 0x30d   :  { %v1826_v22 = vmul.f32 %v2282_v37, %v2270_v60  ;;  %v850_v29 = vadd.f32 %v4116_v27, %v4099_v36  ;;  %v770_v51 = vadd.f32 %v4117_v43, %v4099_v36  ;;  %v4118_v60 = vld [vmem:[#allocation29_spill] sm:$0xff] }
 0x30e   :  { %v1887_v49 = vmul.f32 0.5, %v1871_v23  ;;  %v1714_v35 = vmul.f32 %v1698_v1, %v766_v53  ;;  %v1746_v42 = vmul.f32 %v1730_v48, %v846_v52  ;;  %v1794_v59 = vmul.f32 %v1778_v11, %v926_v39 }
 0x30f   :  { %v1842_v33 = vmul.f32 %v1826_v22, %v1006_v16  ;;  %v930_v54 = vadd.f32 %v4118_v60, %v4099_v36 }
 0x310   :  { %1903 = vst [vmem:[#allocation13 + $0x58] sm:$0xff] %v1887_v49  ;;  %v1762_v10 = vadd.f32 %v1746_v42, %v1714_v35 }
 0x312   :  { %v1810_v7 = vadd.f32 %v1794_v59, %v1762_v10 }
 0x314   :  { %v2284_v55 = vpop.eup %2283  ;;  %v1858_v25 = vadd.f32 %v1842_v33, %v1810_v7 }
 0x315   :  { %v1699_v13 = vmul.f32 %v2284_v55, %v2274_v34  ;;  %v1731_v19 = vmul.f32 %v2284_v55, %v2276_v14  ;;  %v1779_v63 = vmul.f32 %v2284_v55, %v2278_v56  ;;  %v1827_v40 = vmul.f32 %v2284_v55, %v2280_v47  ;;  %v2300_v14 = vld [vmem:[#allocation2 + $0x78] sm:$0xff] }
 0x316   :  { %v1874_v44 = vadd.f32 %v2299_v45, %v1858_v25 }
 0x317   :  { %v1715_v18 = vmul.f32 %v1699_v13, %v770_v51  ;;  %v1747_v28 = vmul.f32 %v1731_v19, %v850_v29  ;;  %v1795_v62 = vmul.f32 %v1779_v63, %v930_v54  ;;  %v1843_v57 = vmul.f32 %v1827_v40, %v1010_v31 }
 0x318   :  { %v1890_v24 = vmul.f32 0.5, %v1874_v44 }
 0x319   :  { %v1763_v58 = vadd.f32 %v1747_v28, %v1715_v18 }
 0x31a   :  { %1906 = vst [vmem:[#allocation13 + $0x70] sm:$0xff] %v1890_v24 }
 0x31b   :  { %v1811_v15 = vadd.f32 %v1795_v62, %v1763_v58 }
 0x31d   :  { %v1859_v34 = vadd.f32 %v1843_v57, %v1811_v15 }
 0x31f   :  { %v1875_v38 = vadd.f32 %v2300_v14, %v1859_v34 }
 0x321   :  { %v1891_v50 = vmul.f32 0.5, %v1875_v38 }
 0x323   :  { %1907 = vst [vmem:[#allocation13 + $0x78] sm:$0xff] %v1891_v50 }
 0x324   :  { %2444 = shalt.err (!%p2441_p10)
}
 0x325   :  { %s2445_s27 = scalar_lea.hbm %s3899_s6, 2048 }
 0x326   :  { %p2446_p11 = scmp.ne.s32.totalorder %s3899_s6, %s2445_s27  ;;  %p2449_p12 = scmp.lt.u32.totalorder %s2445_s27, %s3899_s6 }
 0x328   :  { %p2451_p13 = pnand %p2449_p12, %p2446_p11 }
 0x32a   :  { %2454 = shalt.err (!%p2451_p13)
}
 0x32b   :  { %1919 = dma.vmem_to_hbm [thread:$0]  %s1914_s25, 2048, %s3899_s6, [#allocation4], %s2470_s22, %s2470_s22, %s2471_s23  }
 0x32c   :  { %2463 = dma.done.wait [#allocation4], 2048  }
 0x32d   :  { %2464 = vsyncadd [#allocation4], 4294965248 }
 0x32e   :  { %1923 = vsyncpa [#allocation3], 1 }
 0x32f   :  { %1924 = vsyncpa [#allocation6], 1 }
 0x330   :  { %1925 = vsyncpa [#allocation9], 1 }
 0x331   :  { %1926 = vsyncpa [#allocation12], 1 }
 0x332   :  { %1927 = vsyncpa [#allocation4], 1 }

</bundles_post_ra>
